<compile_context>
chip_gen: v6e
topology: v6e:2x2x1
jax: 0.10.0
libtpu: 0.0.40
codegen_flags: <defaults>
</compile_context>

<pallas_src>
import functools
import math

import jax
import jax.numpy as jnp
from jax import lax
from jax.experimental import pallas as pl
from jax.experimental.pallas import tpu as pltpu

# ---------------- config (small synthetic BloomConfig) ----------------
VOCAB = 128
HIDDEN = 32
N_HEAD = 4
HEAD_DIM = HIDDEN // N_HEAD
N_LAYERS = 2
EPS = 1e-5
SEQ = 8
APPLY_RESIDUAL_POST_LN = False  # BLOOM default


# ---------------- ALiBi slopes (same math as _get_alibi_slopes) --------
def get_alibi_slopes(total_num_heads: int):
    closest_power_of_2 = 2 ** math.floor(math.log2(total_num_heads))
    base = 2 ** (-(2 ** (-(math.log2(closest_power_of_2) - 3))))
    slopes = [base ** p for p in range(1, 1 + closest_power_of_2)]
    if closest_power_of_2 != total_num_heads:
        extra_base = 2 ** (-(2 ** (-(math.log2(2 * closest_power_of_2) - 3))))
        num_remaining = min(closest_power_of_2,
                            total_num_heads - closest_power_of_2)
        extra_powers = range(1, 1 + 2 * num_remaining, 2)
        slopes += [extra_base ** p for p in extra_powers]
    return tuple(float(s) for s in slopes)


ALIBI_SLOPES = get_alibi_slopes(N_HEAD)


# ---------------- fused Bloom kernel ----------------
def _ln(x, g, b, eps):
    """LayerNorm in f32; g/b are (1, H)."""
    mean = jnp.mean(x, axis=-1, keepdims=True)
    xc = x - mean
    var = jnp.mean(xc * xc, axis=-1, keepdims=True)
    return xc * lax.rsqrt(var + eps) * g + b


def _bloom_kernel(h0_ref, gl_ref, small_ref, qkvb_ref, fc1b_ref,
                  qkvw_ref, densew_ref, fc1w_ref, fc2w_ref,
                  out_ref,
                  *, slopes, scale, eps, n_head, head_dim, hidden, n_layers):
    # ---- globals: [emb_ln_g, emb_ln_b, lnf_g, lnf_b] packed as (4, H) ----
    gl = gl_ref[...].astype(jnp.float32)
    emb_g, emb_b = gl[0:1, :], gl[1:2, :]
    lnf_g, lnf_b = gl[2:3, :], gl[3:4, :]

    # word_embeddings_layernorm
    h = _ln(h0_ref[...].astype(jnp.float32), emb_g, emb_b, eps)
    T = h.shape[0]

    # causal + ALiBi bias per head, built ONCE and reused across layers.
    rows = lax.broadcasted_iota(jnp.int32, (T, T), 0)
    cols = lax.broadcasted_iota(jnp.int32, (T, T), 1)
    rel = (cols - rows).astype(jnp.float32)            # j - i  (<= 0 kept)
    causal = cols <= rows
    head_bias = [jnp.where(causal, slopes[hh] * rel, -1e30)
                 for hh in range(n_head)]              # finite neg: no NaNs

    # ================= statically unrolled layer loop =================
    for l in range(n_layers):
        small = small_ref[l]                           # (8, H) f32
        ln1_g, ln1_b = small[0:1, :], small[1:2, :]
        ln2_g, ln2_b = small[2:3, :], small[3:4, :]
        dense_b, fc2_b = small[4:5, :], small[5:6, :]
        qkv_b = qkvb_ref[l]                            # (1, 3H) f32
        fc1_b = fc1b_ref[l]                            # (1, 4H) f32

        qkv_w = qkvw_ref[l]                            # (H, 3H)  bf16
        dense_w = densew_ref[l]                        # (H, H)   bf16
        fc1_w = fc1w_ref[l]                            # (H, 4H)  bf16
        fc2_w = fc2w_ref[l]                            # (4H, H)  bf16

        # ---- input_layernorm ----
        ln1 = _ln(h, ln1_g, ln1_b, eps)
        residual = h                                   # post-LN residual = False

        # ---- BloomAttention: fused qkv matmul + per-head attn + dense ----
        qkv = jnp.dot(ln1.astype(jnp.bfloat16), qkv_w,
                      preferred_element_type=jnp.float32) + qkv_b  # (T, 3H) f32

        # dense(concat_h(o_h)) + dense_b + residual, accumulated per head.
        acc = residual + dense_b
        for hh in range(n_head):
            q = qkv[:, hh * head_dim:(hh + 1) * head_dim]
            k = qkv[:, hidden + hh * head_dim:hidden + (hh + 1) * head_dim]
            v = qkv[:, 2 * hidden + hh * head_dim:
                       2 * hidden + (hh + 1) * head_dim]

            # contraction on last dims of both operands: no explicit k.T
            s = lax.dot_general(q, k, (((1,), (1,)), ((), ())),
                                preferred_element_type=jnp.float32) * scale
            s = s + head_bias[hh]

            m = jnp.max(s, axis=-1, keepdims=True)
            p = jnp.exp(s - m)
            denom = jnp.sum(p, axis=-1, keepdims=True)
            p = p * pl.reciprocal(denom, approx=True)

            oh = jnp.dot(p, v, preferred_element_type=jnp.float32)   # (T, D)
            # 8-aligned sublane row-slice of dense_w: no lane shuffle
            acc = acc + jnp.dot(
                oh.astype(jnp.bfloat16),
                dense_w[hh * head_dim:(hh + 1) * head_dim, :],
                preferred_element_type=jnp.float32)
        attn_out = acc                                 # attn + dense + b + resid

        # ---- post_attention_layernorm + BloomMLP (+ fused residual) ----
        ln2 = _ln(attn_out, ln2_g, ln2_b, eps)
        hm = jnp.dot(ln2.astype(jnp.bfloat16), fc1_w,
                     preferred_element_type=jnp.float32) + fc1_b
        hm = jax.nn.gelu(hm, approximate=True)         # tanh GELU == BloomGelu
        hm = jnp.dot(hm.astype(jnp.bfloat16), fc2_w,
                     preferred_element_type=jnp.float32) + fc2_b
        h = hm + attn_out                              # residual

    # ---- final LayerNorm + store ----
    out_ref[...] = _ln(h, lnf_g, lnf_b, eps).astype(out_ref.dtype)


def bloom_pallas_call(T):
    kernel = functools.partial(
        _bloom_kernel,
        slopes=ALIBI_SLOPES,
        scale=HEAD_DIM ** -0.5,
        eps=EPS,
        n_head=N_HEAD,
        head_dim=HEAD_DIM,
        hidden=HIDDEN,
        n_layers=N_LAYERS,
    )
    # Single invocation, no grid: every input is one whole-array VMEM block.
    return pl.pallas_call(
        kernel,
        out_shape=jax.ShapeDtypeStruct((T, HIDDEN), jnp.float32),
        compiler_params=pltpu.CompilerParams(vmem_limit_bytes=64 * 1024 * 1024),
    )


# ---------------- parameter init (deterministic, synthetic) ------------
def init_params(key):
    def nrm(k, shape, scale=0.02, dtype=jnp.float32):
        return (scale * jax.random.normal(k, shape)).astype(dtype)

    L, H = N_LAYERS, HIDDEN
    keys = jax.random.split(key, 9)

    # Packed per-layer 1-row tensors: rows =
    #   [ln1_g, ln1_b, ln2_g, ln2_b, dense_b, fc2_b, pad, pad]  -> (L, 8, H)
    ln1_g = jnp.ones((L, H), jnp.float32)
    ln1_b = jnp.zeros((L, H), jnp.float32)
    ln2_g = jnp.ones((L, H), jnp.float32)
    ln2_b = jnp.zeros((L, H), jnp.float32)
    dense_b = nrm(keys[4], (L, H))
    fc2_b = nrm(keys[8], (L, H))
    pad = jnp.zeros((L, H), jnp.float32)
    small = jnp.stack([ln1_g, ln1_b, ln2_g, ln2_b, dense_b, fc2_b, pad, pad],
                      axis=1)                           # (L, 8, H)

    # Packed globals: [emb_ln_g, emb_ln_b, lnf_g, lnf_b] -> (4, H)
    gl = jnp.stack([jnp.ones(H), jnp.zeros(H), jnp.ones(H), jnp.zeros(H)],
                   axis=0).astype(jnp.float32)

    return {
        "wte": nrm(keys[0], (VOCAB, H)),
        "gl_ln": gl,
        "small": small,
        "qkv_b": nrm(keys[2], (L, 1, 3 * H)),
        "fc1_b": nrm(keys[6], (L, 1, 4 * H)),
        # big matmul weights stored in bf16 (HBM bandwidth / MXU native path)
        "qkv_w": nrm(keys[1], (L, H, 3 * H), dtype=jnp.bfloat16),
        "dense_w": nrm(keys[3], (L, H, H), dtype=jnp.bfloat16),
        "fc1_w": nrm(keys[5], (L, H, 4 * H), dtype=jnp.bfloat16),
        "fc2_w": nrm(keys[7], (L, 4 * H, H), dtype=jnp.bfloat16),
    }


# ---------------- model forward ----------------
@jax.jit
def bloom_forward(params, input_ids):
    T = input_ids.shape[0]
    # get_input_embeddings gather (glue); the embedding LN happens in-kernel.
    h0 = jnp.take(params["wte"], input_ids, axis=0)     # (T, HIDDEN)
    return bloom_pallas_call(T)(
        h0, params["gl_ln"], params["small"], params["qkv_b"], params["fc1_b"],
        params["qkv_w"], params["dense_w"], params["fc1_w"], params["fc2_w"])


if __name__ == "__main__":
    key = jax.random.PRNGKey(0)
    pkey, ikey = jax.random.split(key)
    params = init_params(pkey)
    input_ids = jax.random.randint(ikey, (SEQ,), 0, VOCAB, dtype=jnp.int32)
    position_ids = jnp.arange(SEQ, dtype=jnp.int32)  # unused (deleted in ref)

    out = bloom_forward(params, input_ids)
    out = jax.block_until_ready(out)
    assert out.shape == (SEQ, HIDDEN)
    assert bool(jnp.all(jnp.isfinite(out)))
    print("KERNEL_OK")
</pallas_src>

<mosaic_0001>
module attributes {stable_mosaic.version = 11 : i64} {
  func.func @_bloom_kernel(%arg0: memref<8x32xf32, #tpu.memory_space<vmem>>, %arg1: memref<4x32xf32, #tpu.memory_space<vmem>>, %arg2: memref<2x8x32xf32, #tpu.memory_space<vmem>>, %arg3: memref<2x1x96xf32, #tpu.memory_space<vmem>>, %arg4: memref<2x1x128xf32, #tpu.memory_space<vmem>>, %arg5: memref<2x32x96xbf16, #tpu.memory_space<vmem>>, %arg6: memref<2x32x32xbf16, #tpu.memory_space<vmem>>, %arg7: memref<2x32x128xbf16, #tpu.memory_space<vmem>>, %arg8: memref<2x128x32xbf16, #tpu.memory_space<vmem>>, %arg9: memref<8x32xf32, #tpu.memory_space<vmem>>) attributes {dimension_semantics = [], scalar_prefetch = 0 : i64, scratch_operands = 0 : i64, tpu.core_type = #tpu.core_type<tc>} {
    %c0 = arith.constant 0 : index
    %c0_0 = arith.constant 0 : index
    %0 = vector.load %arg1[%c0, %c0_0] : memref<4x32xf32, #tpu.memory_space<vmem>>, vector<4x32xf32>
    %1 = vector.extract_strided_slice %0 {offsets = [0, 0], sizes = [1, 32], strides = [1, 1]} : vector<4x32xf32> to vector<1x32xf32>
    %2 = vector.extract_strided_slice %0 {offsets = [1, 0], sizes = [1, 32], strides = [1, 1]} : vector<4x32xf32> to vector<1x32xf32>
    %3 = vector.extract_strided_slice %0 {offsets = [2, 0], sizes = [1, 32], strides = [1, 1]} : vector<4x32xf32> to vector<1x32xf32>
    %4 = vector.extract_strided_slice %0 {offsets = [3, 0], sizes = [1, 32], strides = [1, 1]} : vector<4x32xf32> to vector<1x32xf32>
    %c0_1 = arith.constant 0 : index
    %c0_2 = arith.constant 0 : index
    %5 = vector.load %arg0[%c0_1, %c0_2] : memref<8x32xf32, #tpu.memory_space<vmem>>, vector<8x32xf32>
    %cst = arith.constant dense<0.000000e+00> : vector<8xf32>
    %6 = vector.multi_reduction <add>, %5, %cst [1] : vector<8x32xf32> to vector<8xf32>
    %7 = vector.shape_cast %6 : vector<8xf32> to vector<8x1xf32>
    %cst_3 = arith.constant 3.200000e+01 : f32
    %8 = vector.broadcast %cst_3 : f32 to vector<8x1xf32>
    %9 = arith.divf %7, %8 : vector<8x1xf32>
    %10 = vector.broadcast %9 : vector<8x1xf32> to vector<8x32xf32>
    %11 = arith.subf %5, %10 : vector<8x32xf32>
    %12 = arith.mulf %11, %11 : vector<8x32xf32>
    %cst_4 = arith.constant dense<0.000000e+00> : vector<8xf32>
    %13 = vector.multi_reduction <add>, %12, %cst_4 [1] : vector<8x32xf32> to vector<8xf32>
    %14 = vector.shape_cast %13 : vector<8xf32> to vector<8x1xf32>
    %cst_5 = arith.constant 3.200000e+01 : f32
    %15 = vector.broadcast %cst_5 : f32 to vector<8x1xf32>
    %16 = arith.divf %14, %15 : vector<8x1xf32>
    %cst_6 = arith.constant 9.99999974E-6 : f32
    %17 = vector.broadcast %cst_6 : f32 to vector<8x1xf32>
    %18 = arith.addf %16, %17 : vector<8x1xf32>
    %19 = math.rsqrt %18 : vector<8x1xf32>
    %20 = vector.broadcast %19 : vector<8x1xf32> to vector<8x32xf32>
    %21 = arith.mulf %11, %20 : vector<8x32xf32>
    %22 = vector.broadcast %1 : vector<1x32xf32> to vector<8x32xf32>
    %23 = arith.mulf %21, %22 : vector<8x32xf32>
    %24 = vector.broadcast %2 : vector<1x32xf32> to vector<8x32xf32>
    %25 = arith.addf %23, %24 : vector<8x32xf32>
    %26 = tpu.iota {dimensions = array<i32: 0>} : vector<8x8xi32>
    %27 = tpu.iota {dimensions = array<i32: 1>} : vector<8x8xi32>
    %28 = arith.subi %27, %26 : vector<8x8xi32>
    %29 = arith.sitofp %28 : vector<8x8xi32> to vector<8x8xf32>
    %30 = arith.cmpi sle, %27, %26 : vector<8x8xi32>
    %cst_7 = arith.constant 2.500000e-01 : f32
    %31 = vector.broadcast %cst_7 : f32 to vector<8x8xf32>
    %32 = arith.mulf %31, %29 : vector<8x8xf32>
    %cst_8 = arith.constant -1.000000e+30 : f32
    %33 = vector.broadcast %cst_8 : f32 to vector<8x8xf32>
    %34 = arith.select %30, %32, %33 : vector<8x8xi1>, vector<8x8xf32>
    %cst_9 = arith.constant 6.250000e-02 : f32
    %35 = vector.broadcast %cst_9 : f32 to vector<8x8xf32>
    %36 = arith.mulf %35, %29 : vector<8x8xf32>
    %cst_10 = arith.constant -1.000000e+30 : f32
    %37 = vector.broadcast %cst_10 : f32 to vector<8x8xf32>
    %38 = arith.select %30, %36, %37 : vector<8x8xi1>, vector<8x8xf32>
    %cst_11 = arith.constant 1.562500e-02 : f32
    %39 = vector.broadcast %cst_11 : f32 to vector<8x8xf32>
    %40 = arith.mulf %39, %29 : vector<8x8xf32>
    %cst_12 = arith.constant -1.000000e+30 : f32
    %41 = vector.broadcast %cst_12 : f32 to vector<8x8xf32>
    %42 = arith.select %30, %40, %41 : vector<8x8xi1>, vector<8x8xf32>
    %cst_13 = arith.constant 3.906250e-03 : f32
    %43 = vector.broadcast %cst_13 : f32 to vector<8x8xf32>
    %44 = arith.mulf %43, %29 : vector<8x8xf32>
    %cst_14 = arith.constant -1.000000e+30 : f32
    %45 = vector.broadcast %cst_14 : f32 to vector<8x8xf32>
    %46 = arith.select %30, %44, %45 : vector<8x8xi1>, vector<8x8xf32>
    %c0_15 = arith.constant 0 : index
    %c0_16 = arith.constant 0 : index
    %c0_17 = arith.constant 0 : index
    %47 = vector.load %arg2[%c0_15, %c0_16, %c0_17] : memref<2x8x32xf32, #tpu.memory_space<vmem>>, vector<1x8x32xf32>
    %48 = vector.shape_cast %47 : vector<1x8x32xf32> to vector<8x32xf32>
    %49 = vector.extract_strided_slice %48 {offsets = [0, 0], sizes = [1, 32], strides = [1, 1]} : vector<8x32xf32> to vector<1x32xf32>
    %50 = vector.extract_strided_slice %48 {offsets = [1, 0], sizes = [1, 32], strides = [1, 1]} : vector<8x32xf32> to vector<1x32xf32>
    %51 = vector.extract_strided_slice %48 {offsets = [2, 0], sizes = [1, 32], strides = [1, 1]} : vector<8x32xf32> to vector<1x32xf32>
    %52 = vector.extract_strided_slice %48 {offsets = [3, 0], sizes = [1, 32], strides = [1, 1]} : vector<8x32xf32> to vector<1x32xf32>
    %53 = vector.extract_strided_slice %48 {offsets = [4, 0], sizes = [1, 32], strides = [1, 1]} : vector<8x32xf32> to vector<1x32xf32>
    %54 = vector.extract_strided_slice %48 {offsets = [5, 0], sizes = [1, 32], strides = [1, 1]} : vector<8x32xf32> to vector<1x32xf32>
    %c0_18 = arith.constant 0 : index
    %c0_19 = arith.constant 0 : index
    %c0_20 = arith.constant 0 : index
    %55 = vector.load %arg3[%c0_18, %c0_19, %c0_20] : memref<2x1x96xf32, #tpu.memory_space<vmem>>, vector<1x1x96xf32>
    %56 = vector.shape_cast %55 : vector<1x1x96xf32> to vector<1x96xf32>
    %c0_21 = arith.constant 0 : index
    %c0_22 = arith.constant 0 : index
    %c0_23 = arith.constant 0 : index
    %57 = vector.load %arg4[%c0_21, %c0_22, %c0_23] : memref<2x1x128xf32, #tpu.memory_space<vmem>>, vector<1x1x128xf32>
    %58 = vector.shape_cast %57 : vector<1x1x128xf32> to vector<1x128xf32>
    %c0_24 = arith.constant 0 : index
    %c0_25 = arith.constant 0 : index
    %c0_26 = arith.constant 0 : index
    %59 = vector.load %arg5[%c0_24, %c0_25, %c0_26] : memref<2x32x96xbf16, #tpu.memory_space<vmem>>, vector<1x32x96xbf16>
    %60 = vector.shape_cast %59 : vector<1x32x96xbf16> to vector<32x96xbf16>
    %c0_27 = arith.constant 0 : index
    %c0_28 = arith.constant 0 : index
    %c0_29 = arith.constant 0 : index
    %61 = vector.load %arg6[%c0_27, %c0_28, %c0_29] : memref<2x32x32xbf16, #tpu.memory_space<vmem>>, vector<1x32x32xbf16>
    %62 = vector.shape_cast %61 : vector<1x32x32xbf16> to vector<32x32xbf16>
    %c0_30 = arith.constant 0 : index
    %c0_31 = arith.constant 0 : index
    %c0_32 = arith.constant 0 : index
    %63 = vector.load %arg7[%c0_30, %c0_31, %c0_32] : memref<2x32x128xbf16, #tpu.memory_space<vmem>>, vector<1x32x128xbf16>
    %64 = vector.shape_cast %63 : vector<1x32x128xbf16> to vector<32x128xbf16>
    %c0_33 = arith.constant 0 : index
    %c0_34 = arith.constant 0 : index
    %c0_35 = arith.constant 0 : index
    %65 = vector.load %arg8[%c0_33, %c0_34, %c0_35] : memref<2x128x32xbf16, #tpu.memory_space<vmem>>, vector<1x128x32xbf16>
    %66 = vector.shape_cast %65 : vector<1x128x32xbf16> to vector<128x32xbf16>
    %cst_36 = arith.constant dense<0.000000e+00> : vector<8xf32>
    %67 = vector.multi_reduction <add>, %25, %cst_36 [1] : vector<8x32xf32> to vector<8xf32>
    %68 = vector.shape_cast %67 : vector<8xf32> to vector<8x1xf32>
    %cst_37 = arith.constant 3.200000e+01 : f32
    %69 = vector.broadcast %cst_37 : f32 to vector<8x1xf32>
    %70 = arith.divf %68, %69 : vector<8x1xf32>
    %71 = vector.broadcast %70 : vector<8x1xf32> to vector<8x32xf32>
    %72 = arith.subf %25, %71 : vector<8x32xf32>
    %73 = arith.mulf %72, %72 : vector<8x32xf32>
    %cst_38 = arith.constant dense<0.000000e+00> : vector<8xf32>
    %74 = vector.multi_reduction <add>, %73, %cst_38 [1] : vector<8x32xf32> to vector<8xf32>
    %75 = vector.shape_cast %74 : vector<8xf32> to vector<8x1xf32>
    %cst_39 = arith.constant 3.200000e+01 : f32
    %76 = vector.broadcast %cst_39 : f32 to vector<8x1xf32>
    %77 = arith.divf %75, %76 : vector<8x1xf32>
    %cst_40 = arith.constant 9.99999974E-6 : f32
    %78 = vector.broadcast %cst_40 : f32 to vector<8x1xf32>
    %79 = arith.addf %77, %78 : vector<8x1xf32>
    %80 = math.rsqrt %79 : vector<8x1xf32>
    %81 = vector.broadcast %80 : vector<8x1xf32> to vector<8x32xf32>
    %82 = arith.mulf %72, %81 : vector<8x32xf32>
    %83 = vector.broadcast %49 : vector<1x32xf32> to vector<8x32xf32>
    %84 = arith.mulf %82, %83 : vector<8x32xf32>
    %85 = vector.broadcast %50 : vector<1x32xf32> to vector<8x32xf32>
    %86 = arith.addf %84, %85 : vector<8x32xf32>
    %87 = arith.truncf %86 : vector<8x32xf32> to vector<8x32xbf16>
    %cst_41 = arith.constant dense<0.000000e+00> : vector<8x96xf32>
    %88 = tpu.matmul %87, %60, %cst_41 {dimension_numbers = #tpu.dot_dimension_numbers<[1], [0], [0], [1], [0, 0, 1, 1], [], []>} : vector<8x32xbf16>, vector<32x96xbf16>, vector<8x96xf32> -> vector<8x96xf32>
    %89 = vector.broadcast %56 : vector<1x96xf32> to vector<8x96xf32>
    %90 = arith.addf %88, %89 : vector<8x96xf32>
    %91 = vector.broadcast %53 : vector<1x32xf32> to vector<8x32xf32>
    %92 = arith.addf %25, %91 : vector<8x32xf32>
    %93 = vector.extract_strided_slice %90 {offsets = [0, 0], sizes = [8, 8], strides = [1, 1]} : vector<8x96xf32> to vector<8x8xf32>
    %94 = vector.extract_strided_slice %90 {offsets = [0, 32], sizes = [8, 8], strides = [1, 1]} : vector<8x96xf32> to vector<8x8xf32>
    %95 = vector.extract_strided_slice %90 {offsets = [0, 64], sizes = [8, 8], strides = [1, 1]} : vector<8x96xf32> to vector<8x8xf32>
    %cst_42 = arith.constant dense<0.000000e+00> : vector<8x8xf32>
    %96 = tpu.matmul %93, %94, %cst_42 {dimension_numbers = #tpu.dot_dimension_numbers<[1], [1], [0], [0], [0, 0, 1, 0], [], []>} : vector<8x8xf32>, vector<8x8xf32>, vector<8x8xf32> -> vector<8x8xf32>
    %cst_43 = arith.constant 0.353553385 : f32
    %97 = vector.broadcast %cst_43 : f32 to vector<8x8xf32>
    %98 = arith.mulf %96, %97 : vector<8x8xf32>
    %99 = arith.addf %98, %34 : vector<8x8xf32>
    %cst_44 = arith.constant dense<0xFF800000> : vector<8xf32>
    %100 = vector.multi_reduction <maximumf>, %99, %cst_44 [1] : vector<8x8xf32> to vector<8xf32>
    %101 = vector.shape_cast %100 : vector<8xf32> to vector<8x1xf32>
    %102 = vector.broadcast %101 : vector<8x1xf32> to vector<8x8xf32>
    %103 = arith.subf %99, %102 : vector<8x8xf32>
    %104 = math.exp %103 : vector<8x8xf32>
    %cst_45 = arith.constant dense<0.000000e+00> : vector<8xf32>
    %105 = vector.multi_reduction <add>, %104, %cst_45 [1] : vector<8x8xf32> to vector<8xf32>
    %106 = vector.shape_cast %105 : vector<8xf32> to vector<8x1xf32>
    %107 = tpu.reciprocal %106 {approx = true} : vector<8x1xf32> -> vector<8x1xf32>
    %108 = vector.broadcast %107 : vector<8x1xf32> to vector<8x8xf32>
    %109 = arith.mulf %104, %108 : vector<8x8xf32>
    %cst_46 = arith.constant dense<0.000000e+00> : vector<8x8xf32>
    %110 = tpu.matmul %109, %95, %cst_46 {dimension_numbers = #tpu.dot_dimension_numbers<[1], [0], [0], [1], [0, 0, 1, 1], [], []>} : vector<8x8xf32>, vector<8x8xf32>, vector<8x8xf32> -> vector<8x8xf32>
    %111 = arith.truncf %110 : vector<8x8xf32> to vector<8x8xbf16>
    %112 = vector.extract_strided_slice %62 {offsets = [0, 0], sizes = [8, 32], strides = [1, 1]} : vector<32x32xbf16> to vector<8x32xbf16>
    %cst_47 = arith.constant dense<0.000000e+00> : vector<8x32xf32>
    %113 = tpu.matmul %111, %112, %cst_47 {dimension_numbers = #tpu.dot_dimension_numbers<[1], [0], [0], [1], [0, 0, 1, 1], [], []>} : vector<8x8xbf16>, vector<8x32xbf16>, vector<8x32xf32> -> vector<8x32xf32>
    %114 = arith.addf %92, %113 : vector<8x32xf32>
    %115 = vector.extract_strided_slice %90 {offsets = [0, 8], sizes = [8, 8], strides = [1, 1]} : vector<8x96xf32> to vector<8x8xf32>
    %116 = vector.extract_strided_slice %90 {offsets = [0, 40], sizes = [8, 8], strides = [1, 1]} : vector<8x96xf32> to vector<8x8xf32>
    %117 = vector.extract_strided_slice %90 {offsets = [0, 72], sizes = [8, 8], strides = [1, 1]} : vector<8x96xf32> to vector<8x8xf32>
    %cst_48 = arith.constant dense<0.000000e+00> : vector<8x8xf32>
    %118 = tpu.matmul %115, %116, %cst_48 {dimension_numbers = #tpu.dot_dimension_numbers<[1], [1], [0], [0], [0, 0, 1, 0], [], []>} : vector<8x8xf32>, vector<8x8xf32>, vector<8x8xf32> -> vector<8x8xf32>
    %cst_49 = arith.constant 0.353553385 : f32
    %119 = vector.broadcast %cst_49 : f32 to vector<8x8xf32>
    %120 = arith.mulf %118, %119 : vector<8x8xf32>
    %121 = arith.addf %120, %38 : vector<8x8xf32>
    %cst_50 = arith.constant dense<0xFF800000> : vector<8xf32>
    %122 = vector.multi_reduction <maximumf>, %121, %cst_50 [1] : vector<8x8xf32> to vector<8xf32>
    %123 = vector.shape_cast %122 : vector<8xf32> to vector<8x1xf32>
    %124 = vector.broadcast %123 : vector<8x1xf32> to vector<8x8xf32>
    %125 = arith.subf %121, %124 : vector<8x8xf32>
    %126 = math.exp %125 : vector<8x8xf32>
    %cst_51 = arith.constant dense<0.000000e+00> : vector<8xf32>
    %127 = vector.multi_reduction <add>, %126, %cst_51 [1] : vector<8x8xf32> to vector<8xf32>
    %128 = vector.shape_cast %127 : vector<8xf32> to vector<8x1xf32>
    %129 = tpu.reciprocal %128 {approx = true} : vector<8x1xf32> -> vector<8x1xf32>
    %130 = vector.broadcast %129 : vector<8x1xf32> to vector<8x8xf32>
    %131 = arith.mulf %126, %130 : vector<8x8xf32>
    %cst_52 = arith.constant dense<0.000000e+00> : vector<8x8xf32>
    %132 = tpu.matmul %131, %117, %cst_52 {dimension_numbers = #tpu.dot_dimension_numbers<[1], [0], [0], [1], [0, 0, 1, 1], [], []>} : vector<8x8xf32>, vector<8x8xf32>, vector<8x8xf32> -> vector<8x8xf32>
    %133 = arith.truncf %132 : vector<8x8xf32> to vector<8x8xbf16>
    %134 = vector.extract_strided_slice %62 {offsets = [8, 0], sizes = [8, 32], strides = [1, 1]} : vector<32x32xbf16> to vector<8x32xbf16>
    %cst_53 = arith.constant dense<0.000000e+00> : vector<8x32xf32>
    %135 = tpu.matmul %133, %134, %cst_53 {dimension_numbers = #tpu.dot_dimension_numbers<[1], [0], [0], [1], [0, 0, 1, 1], [], []>} : vector<8x8xbf16>, vector<8x32xbf16>, vector<8x32xf32> -> vector<8x32xf32>
    %136 = arith.addf %114, %135 : vector<8x32xf32>
    %137 = vector.extract_strided_slice %90 {offsets = [0, 16], sizes = [8, 8], strides = [1, 1]} : vector<8x96xf32> to vector<8x8xf32>
    %138 = vector.extract_strided_slice %90 {offsets = [0, 48], sizes = [8, 8], strides = [1, 1]} : vector<8x96xf32> to vector<8x8xf32>
    %139 = vector.extract_strided_slice %90 {offsets = [0, 80], sizes = [8, 8], strides = [1, 1]} : vector<8x96xf32> to vector<8x8xf32>
    %cst_54 = arith.constant dense<0.000000e+00> : vector<8x8xf32>
    %140 = tpu.matmul %137, %138, %cst_54 {dimension_numbers = #tpu.dot_dimension_numbers<[1], [1], [0], [0], [0, 0, 1, 0], [], []>} : vector<8x8xf32>, vector<8x8xf32>, vector<8x8xf32> -> vector<8x8xf32>
    %cst_55 = arith.constant 0.353553385 : f32
    %141 = vector.broadcast %cst_55 : f32 to vector<8x8xf32>
    %142 = arith.mulf %140, %141 : vector<8x8xf32>
    %143 = arith.addf %142, %42 : vector<8x8xf32>
    %cst_56 = arith.constant dense<0xFF800000> : vector<8xf32>
    %144 = vector.multi_reduction <maximumf>, %143, %cst_56 [1] : vector<8x8xf32> to vector<8xf32>
    %145 = vector.shape_cast %144 : vector<8xf32> to vector<8x1xf32>
    %146 = vector.broadcast %145 : vector<8x1xf32> to vector<8x8xf32>
    %147 = arith.subf %143, %146 : vector<8x8xf32>
    %148 = math.exp %147 : vector<8x8xf32>
    %cst_57 = arith.constant dense<0.000000e+00> : vector<8xf32>
    %149 = vector.multi_reduction <add>, %148, %cst_57 [1] : vector<8x8xf32> to vector<8xf32>
    %150 = vector.shape_cast %149 : vector<8xf32> to vector<8x1xf32>
    %151 = tpu.reciprocal %150 {approx = true} : vector<8x1xf32> -> vector<8x1xf32>
    %152 = vector.broadcast %151 : vector<8x1xf32> to vector<8x8xf32>
    %153 = arith.mulf %148, %152 : vector<8x8xf32>
    %cst_58 = arith.constant dense<0.000000e+00> : vector<8x8xf32>
    %154 = tpu.matmul %153, %139, %cst_58 {dimension_numbers = #tpu.dot_dimension_numbers<[1], [0], [0], [1], [0, 0, 1, 1], [], []>} : vector<8x8xf32>, vector<8x8xf32>, vector<8x8xf32> -> vector<8x8xf32>
    %155 = arith.truncf %154 : vector<8x8xf32> to vector<8x8xbf16>
    %156 = vector.extract_strided_slice %62 {offsets = [16, 0], sizes = [8, 32], strides = [1, 1]} : vector<32x32xbf16> to vector<8x32xbf16>
    %cst_59 = arith.constant dense<0.000000e+00> : vector<8x32xf32>
    %157 = tpu.matmul %155, %156, %cst_59 {dimension_numbers = #tpu.dot_dimension_numbers<[1], [0], [0], [1], [0, 0, 1, 1], [], []>} : vector<8x8xbf16>, vector<8x32xbf16>, vector<8x32xf32> -> vector<8x32xf32>
    %158 = arith.addf %136, %157 : vector<8x32xf32>
    %159 = vector.extract_strided_slice %90 {offsets = [0, 24], sizes = [8, 8], strides = [1, 1]} : vector<8x96xf32> to vector<8x8xf32>
    %160 = vector.extract_strided_slice %90 {offsets = [0, 56], sizes = [8, 8], strides = [1, 1]} : vector<8x96xf32> to vector<8x8xf32>
    %161 = vector.extract_strided_slice %90 {offsets = [0, 88], sizes = [8, 8], strides = [1, 1]} : vector<8x96xf32> to vector<8x8xf32>
    %cst_60 = arith.constant dense<0.000000e+00> : vector<8x8xf32>
    %162 = tpu.matmul %159, %160, %cst_60 {dimension_numbers = #tpu.dot_dimension_numbers<[1], [1], [0], [0], [0, 0, 1, 0], [], []>} : vector<8x8xf32>, vector<8x8xf32>, vector<8x8xf32> -> vector<8x8xf32>
    %cst_61 = arith.constant 0.353553385 : f32
    %163 = vector.broadcast %cst_61 : f32 to vector<8x8xf32>
    %164 = arith.mulf %162, %163 : vector<8x8xf32>
    %165 = arith.addf %164, %46 : vector<8x8xf32>
    %cst_62 = arith.constant dense<0xFF800000> : vector<8xf32>
    %166 = vector.multi_reduction <maximumf>, %165, %cst_62 [1] : vector<8x8xf32> to vector<8xf32>
    %167 = vector.shape_cast %166 : vector<8xf32> to vector<8x1xf32>
    %168 = vector.broadcast %167 : vector<8x1xf32> to vector<8x8xf32>
    %169 = arith.subf %165, %168 : vector<8x8xf32>
    %170 = math.exp %169 : vector<8x8xf32>
    %cst_63 = arith.constant dense<0.000000e+00> : vector<8xf32>
    %171 = vector.multi_reduction <add>, %170, %cst_63 [1] : vector<8x8xf32> to vector<8xf32>
    %172 = vector.shape_cast %171 : vector<8xf32> to vector<8x1xf32>
    %173 = tpu.reciprocal %172 {approx = true} : vector<8x1xf32> -> vector<8x1xf32>
    %174 = vector.broadcast %173 : vector<8x1xf32> to vector<8x8xf32>
    %175 = arith.mulf %170, %174 : vector<8x8xf32>
    %cst_64 = arith.constant dense<0.000000e+00> : vector<8x8xf32>
    %176 = tpu.matmul %175, %161, %cst_64 {dimension_numbers = #tpu.dot_dimension_numbers<[1], [0], [0], [1], [0, 0, 1, 1], [], []>} : vector<8x8xf32>, vector<8x8xf32>, vector<8x8xf32> -> vector<8x8xf32>
    %177 = arith.truncf %176 : vector<8x8xf32> to vector<8x8xbf16>
    %178 = vector.extract_strided_slice %62 {offsets = [24, 0], sizes = [8, 32], strides = [1, 1]} : vector<32x32xbf16> to vector<8x32xbf16>
    %cst_65 = arith.constant dense<0.000000e+00> : vector<8x32xf32>
    %179 = tpu.matmul %177, %178, %cst_65 {dimension_numbers = #tpu.dot_dimension_numbers<[1], [0], [0], [1], [0, 0, 1, 1], [], []>} : vector<8x8xbf16>, vector<8x32xbf16>, vector<8x32xf32> -> vector<8x32xf32>
    %180 = arith.addf %158, %179 : vector<8x32xf32>
    %cst_66 = arith.constant dense<0.000000e+00> : vector<8xf32>
    %181 = vector.multi_reduction <add>, %180, %cst_66 [1] : vector<8x32xf32> to vector<8xf32>
    %182 = vector.shape_cast %181 : vector<8xf32> to vector<8x1xf32>
    %cst_67 = arith.constant 3.200000e+01 : f32
    %183 = vector.broadcast %cst_67 : f32 to vector<8x1xf32>
    %184 = arith.divf %182, %183 : vector<8x1xf32>
    %185 = vector.broadcast %184 : vector<8x1xf32> to vector<8x32xf32>
    %186 = arith.subf %180, %185 : vector<8x32xf32>
    %187 = arith.mulf %186, %186 : vector<8x32xf32>
    %cst_68 = arith.constant dense<0.000000e+00> : vector<8xf32>
    %188 = vector.multi_reduction <add>, %187, %cst_68 [1] : vector<8x32xf32> to vector<8xf32>
    %189 = vector.shape_cast %188 : vector<8xf32> to vector<8x1xf32>
    %cst_69 = arith.constant 3.200000e+01 : f32
    %190 = vector.broadcast %cst_69 : f32 to vector<8x1xf32>
    %191 = arith.divf %189, %190 : vector<8x1xf32>
    %cst_70 = arith.constant 9.99999974E-6 : f32
    %192 = vector.broadcast %cst_70 : f32 to vector<8x1xf32>
    %193 = arith.addf %191, %192 : vector<8x1xf32>
    %194 = math.rsqrt %193 : vector<8x1xf32>
    %195 = vector.broadcast %194 : vector<8x1xf32> to vector<8x32xf32>
    %196 = arith.mulf %186, %195 : vector<8x32xf32>
    %197 = vector.broadcast %51 : vector<1x32xf32> to vector<8x32xf32>
    %198 = arith.mulf %196, %197 : vector<8x32xf32>
    %199 = vector.broadcast %52 : vector<1x32xf32> to vector<8x32xf32>
    %200 = arith.addf %198, %199 : vector<8x32xf32>
    %201 = arith.truncf %200 : vector<8x32xf32> to vector<8x32xbf16>
    %cst_71 = arith.constant dense<0.000000e+00> : vector<8x128xf32>
    %202 = tpu.matmul %201, %64, %cst_71 {dimension_numbers = #tpu.dot_dimension_numbers<[1], [0], [0], [1], [0, 0, 1, 1], [], []>} : vector<8x32xbf16>, vector<32x128xbf16>, vector<8x128xf32> -> vector<8x128xf32>
    %203 = vector.broadcast %58 : vector<1x128xf32> to vector<8x128xf32>
    %204 = arith.addf %202, %203 : vector<8x128xf32>
    %205 = arith.mulf %204, %204 : vector<8x128xf32>
    %206 = arith.mulf %204, %205 : vector<8x128xf32>
    %cst_72 = arith.constant 4.471500e-02 : f32
    %207 = vector.broadcast %cst_72 : f32 to vector<8x128xf32>
    %208 = arith.mulf %207, %206 : vector<8x128xf32>
    %209 = arith.addf %204, %208 : vector<8x128xf32>
    %cst_73 = arith.constant 0.797884583 : f32
    %210 = vector.broadcast %cst_73 : f32 to vector<8x128xf32>
    %211 = arith.mulf %210, %209 : vector<8x128xf32>
    %212 = math.tanh %211 : vector<8x128xf32>
    %cst_74 = arith.constant 1.000000e+00 : f32
    %213 = vector.broadcast %cst_74 : f32 to vector<8x128xf32>
    %214 = arith.addf %213, %212 : vector<8x128xf32>
    %cst_75 = arith.constant 5.000000e-01 : f32
    %215 = vector.broadcast %cst_75 : f32 to vector<8x128xf32>
    %216 = arith.mulf %215, %214 : vector<8x128xf32>
    %217 = arith.mulf %204, %216 : vector<8x128xf32>
    %218 = arith.truncf %217 : vector<8x128xf32> to vector<8x128xbf16>
    %cst_76 = arith.constant dense<0.000000e+00> : vector<8x32xf32>
    %219 = tpu.matmul %218, %66, %cst_76 {dimension_numbers = #tpu.dot_dimension_numbers<[1], [0], [0], [1], [0, 0, 1, 1], [], []>} : vector<8x128xbf16>, vector<128x32xbf16>, vector<8x32xf32> -> vector<8x32xf32>
    %220 = vector.broadcast %54 : vector<1x32xf32> to vector<8x32xf32>
    %221 = arith.addf %219, %220 : vector<8x32xf32>
    %222 = arith.addf %221, %180 : vector<8x32xf32>
    %c1 = arith.constant 1 : index
    %c0_77 = arith.constant 0 : index
    %c0_78 = arith.constant 0 : index
    %223 = vector.load %arg2[%c1, %c0_77, %c0_78] : memref<2x8x32xf32, #tpu.memory_space<vmem>>, vector<1x8x32xf32>
    %224 = vector.shape_cast %223 : vector<1x8x32xf32> to vector<8x32xf32>
    %225 = vector.extract_strided_slice %224 {offsets = [0, 0], sizes = [1, 32], strides = [1, 1]} : vector<8x32xf32> to vector<1x32xf32>
    %226 = vector.extract_strided_slice %224 {offsets = [1, 0], sizes = [1, 32], strides = [1, 1]} : vector<8x32xf32> to vector<1x32xf32>
    %227 = vector.extract_strided_slice %224 {offsets = [2, 0], sizes = [1, 32], strides = [1, 1]} : vector<8x32xf32> to vector<1x32xf32>
    %228 = vector.extract_strided_slice %224 {offsets = [3, 0], sizes = [1, 32], strides = [1, 1]} : vector<8x32xf32> to vector<1x32xf32>
    %229 = vector.extract_strided_slice %224 {offsets = [4, 0], sizes = [1, 32], strides = [1, 1]} : vector<8x32xf32> to vector<1x32xf32>
    %230 = vector.extract_strided_slice %224 {offsets = [5, 0], sizes = [1, 32], strides = [1, 1]} : vector<8x32xf32> to vector<1x32xf32>
    %c1_79 = arith.constant 1 : index
    %c0_80 = arith.constant 0 : index
    %c0_81 = arith.constant 0 : index
    %231 = vector.load %arg3[%c1_79, %c0_80, %c0_81] : memref<2x1x96xf32, #tpu.memory_space<vmem>>, vector<1x1x96xf32>
    %232 = vector.shape_cast %231 : vector<1x1x96xf32> to vector<1x96xf32>
    %c1_82 = arith.constant 1 : index
    %c0_83 = arith.constant 0 : index
    %c0_84 = arith.constant 0 : index
    %233 = vector.load %arg4[%c1_82, %c0_83, %c0_84] : memref<2x1x128xf32, #tpu.memory_space<vmem>>, vector<1x1x128xf32>
    %234 = vector.shape_cast %233 : vector<1x1x128xf32> to vector<1x128xf32>
    %c1_85 = arith.constant 1 : index
    %c0_86 = arith.constant 0 : index
    %c0_87 = arith.constant 0 : index
    %235 = vector.load %arg5[%c1_85, %c0_86, %c0_87] : memref<2x32x96xbf16, #tpu.memory_space<vmem>>, vector<1x32x96xbf16>
    %236 = vector.shape_cast %235 : vector<1x32x96xbf16> to vector<32x96xbf16>
    %c1_88 = arith.constant 1 : index
    %c0_89 = arith.constant 0 : index
    %c0_90 = arith.constant 0 : index
    %237 = vector.load %arg6[%c1_88, %c0_89, %c0_90] : memref<2x32x32xbf16, #tpu.memory_space<vmem>>, vector<1x32x32xbf16>
    %238 = vector.shape_cast %237 : vector<1x32x32xbf16> to vector<32x32xbf16>
    %c1_91 = arith.constant 1 : index
    %c0_92 = arith.constant 0 : index
    %c0_93 = arith.constant 0 : index
    %239 = vector.load %arg7[%c1_91, %c0_92, %c0_93] : memref<2x32x128xbf16, #tpu.memory_space<vmem>>, vector<1x32x128xbf16>
    %240 = vector.shape_cast %239 : vector<1x32x128xbf16> to vector<32x128xbf16>
    %c1_94 = arith.constant 1 : index
    %c0_95 = arith.constant 0 : index
    %c0_96 = arith.constant 0 : index
    %241 = vector.load %arg8[%c1_94, %c0_95, %c0_96] : memref<2x128x32xbf16, #tpu.memory_space<vmem>>, vector<1x128x32xbf16>
    %242 = vector.shape_cast %241 : vector<1x128x32xbf16> to vector<128x32xbf16>
    %cst_97 = arith.constant dense<0.000000e+00> : vector<8xf32>
    %243 = vector.multi_reduction <add>, %222, %cst_97 [1] : vector<8x32xf32> to vector<8xf32>
    %244 = vector.shape_cast %243 : vector<8xf32> to vector<8x1xf32>
    %cst_98 = arith.constant 3.200000e+01 : f32
    %245 = vector.broadcast %cst_98 : f32 to vector<8x1xf32>
    %246 = arith.divf %244, %245 : vector<8x1xf32>
    %247 = vector.broadcast %246 : vector<8x1xf32> to vector<8x32xf32>
    %248 = arith.subf %222, %247 : vector<8x32xf32>
    %249 = arith.mulf %248, %248 : vector<8x32xf32>
    %cst_99 = arith.constant dense<0.000000e+00> : vector<8xf32>
    %250 = vector.multi_reduction <add>, %249, %cst_99 [1] : vector<8x32xf32> to vector<8xf32>
    %251 = vector.shape_cast %250 : vector<8xf32> to vector<8x1xf32>
    %cst_100 = arith.constant 3.200000e+01 : f32
    %252 = vector.broadcast %cst_100 : f32 to vector<8x1xf32>
    %253 = arith.divf %251, %252 : vector<8x1xf32>
    %cst_101 = arith.constant 9.99999974E-6 : f32
    %254 = vector.broadcast %cst_101 : f32 to vector<8x1xf32>
    %255 = arith.addf %253, %254 : vector<8x1xf32>
    %256 = math.rsqrt %255 : vector<8x1xf32>
    %257 = vector.broadcast %256 : vector<8x1xf32> to vector<8x32xf32>
    %258 = arith.mulf %248, %257 : vector<8x32xf32>
    %259 = vector.broadcast %225 : vector<1x32xf32> to vector<8x32xf32>
    %260 = arith.mulf %258, %259 : vector<8x32xf32>
    %261 = vector.broadcast %226 : vector<1x32xf32> to vector<8x32xf32>
    %262 = arith.addf %260, %261 : vector<8x32xf32>
    %263 = arith.truncf %262 : vector<8x32xf32> to vector<8x32xbf16>
    %cst_102 = arith.constant dense<0.000000e+00> : vector<8x96xf32>
    %264 = tpu.matmul %263, %236, %cst_102 {dimension_numbers = #tpu.dot_dimension_numbers<[1], [0], [0], [1], [0, 0, 1, 1], [], []>} : vector<8x32xbf16>, vector<32x96xbf16>, vector<8x96xf32> -> vector<8x96xf32>
    %265 = vector.broadcast %232 : vector<1x96xf32> to vector<8x96xf32>
    %266 = arith.addf %264, %265 : vector<8x96xf32>
    %267 = vector.broadcast %229 : vector<1x32xf32> to vector<8x32xf32>
    %268 = arith.addf %222, %267 : vector<8x32xf32>
    %269 = vector.extract_strided_slice %266 {offsets = [0, 0], sizes = [8, 8], strides = [1, 1]} : vector<8x96xf32> to vector<8x8xf32>
    %270 = vector.extract_strided_slice %266 {offsets = [0, 32], sizes = [8, 8], strides = [1, 1]} : vector<8x96xf32> to vector<8x8xf32>
    %271 = vector.extract_strided_slice %266 {offsets = [0, 64], sizes = [8, 8], strides = [1, 1]} : vector<8x96xf32> to vector<8x8xf32>
    %cst_103 = arith.constant dense<0.000000e+00> : vector<8x8xf32>
    %272 = tpu.matmul %269, %270, %cst_103 {dimension_numbers = #tpu.dot_dimension_numbers<[1], [1], [0], [0], [0, 0, 1, 0], [], []>} : vector<8x8xf32>, vector<8x8xf32>, vector<8x8xf32> -> vector<8x8xf32>
    %cst_104 = arith.constant 0.353553385 : f32
    %273 = vector.broadcast %cst_104 : f32 to vector<8x8xf32>
    %274 = arith.mulf %272, %273 : vector<8x8xf32>
    %275 = arith.addf %274, %34 : vector<8x8xf32>
    %cst_105 = arith.constant dense<0xFF800000> : vector<8xf32>
    %276 = vector.multi_reduction <maximumf>, %275, %cst_105 [1] : vector<8x8xf32> to vector<8xf32>
    %277 = vector.shape_cast %276 : vector<8xf32> to vector<8x1xf32>
    %278 = vector.broadcast %277 : vector<8x1xf32> to vector<8x8xf32>
    %279 = arith.subf %275, %278 : vector<8x8xf32>
    %280 = math.exp %279 : vector<8x8xf32>
    %cst_106 = arith.constant dense<0.000000e+00> : vector<8xf32>
    %281 = vector.multi_reduction <add>, %280, %cst_106 [1] : vector<8x8xf32> to vector<8xf32>
    %282 = vector.shape_cast %281 : vector<8xf32> to vector<8x1xf32>
    %283 = tpu.reciprocal %282 {approx = true} : vector<8x1xf32> -> vector<8x1xf32>
    %284 = vector.broadcast %283 : vector<8x1xf32> to vector<8x8xf32>
    %285 = arith.mulf %280, %284 : vector<8x8xf32>
    %cst_107 = arith.constant dense<0.000000e+00> : vector<8x8xf32>
    %286 = tpu.matmul %285, %271, %cst_107 {dimension_numbers = #tpu.dot_dimension_numbers<[1], [0], [0], [1], [0, 0, 1, 1], [], []>} : vector<8x8xf32>, vector<8x8xf32>, vector<8x8xf32> -> vector<8x8xf32>
    %287 = arith.truncf %286 : vector<8x8xf32> to vector<8x8xbf16>
    %288 = vector.extract_strided_slice %238 {offsets = [0, 0], sizes = [8, 32], strides = [1, 1]} : vector<32x32xbf16> to vector<8x32xbf16>
    %cst_108 = arith.constant dense<0.000000e+00> : vector<8x32xf32>
    %289 = tpu.matmul %287, %288, %cst_108 {dimension_numbers = #tpu.dot_dimension_numbers<[1], [0], [0], [1], [0, 0, 1, 1], [], []>} : vector<8x8xbf16>, vector<8x32xbf16>, vector<8x32xf32> -> vector<8x32xf32>
    %290 = arith.addf %268, %289 : vector<8x32xf32>
    %291 = vector.extract_strided_slice %266 {offsets = [0, 8], sizes = [8, 8], strides = [1, 1]} : vector<8x96xf32> to vector<8x8xf32>
    %292 = vector.extract_strided_slice %266 {offsets = [0, 40], sizes = [8, 8], strides = [1, 1]} : vector<8x96xf32> to vector<8x8xf32>
    %293 = vector.extract_strided_slice %266 {offsets = [0, 72], sizes = [8, 8], strides = [1, 1]} : vector<8x96xf32> to vector<8x8xf32>
    %cst_109 = arith.constant dense<0.000000e+00> : vector<8x8xf32>
    %294 = tpu.matmul %291, %292, %cst_109 {dimension_numbers = #tpu.dot_dimension_numbers<[1], [1], [0], [0], [0, 0, 1, 0], [], []>} : vector<8x8xf32>, vector<8x8xf32>, vector<8x8xf32> -> vector<8x8xf32>
    %cst_110 = arith.constant 0.353553385 : f32
    %295 = vector.broadcast %cst_110 : f32 to vector<8x8xf32>
    %296 = arith.mulf %294, %295 : vector<8x8xf32>
    %297 = arith.addf %296, %38 : vector<8x8xf32>
    %cst_111 = arith.constant dense<0xFF800000> : vector<8xf32>
    %298 = vector.multi_reduction <maximumf>, %297, %cst_111 [1] : vector<8x8xf32> to vector<8xf32>
    %299 = vector.shape_cast %298 : vector<8xf32> to vector<8x1xf32>
    %300 = vector.broadcast %299 : vector<8x1xf32> to vector<8x8xf32>
    %301 = arith.subf %297, %300 : vector<8x8xf32>
    %302 = math.exp %301 : vector<8x8xf32>
    %cst_112 = arith.constant dense<0.000000e+00> : vector<8xf32>
    %303 = vector.multi_reduction <add>, %302, %cst_112 [1] : vector<8x8xf32> to vector<8xf32>
    %304 = vector.shape_cast %303 : vector<8xf32> to vector<8x1xf32>
    %305 = tpu.reciprocal %304 {approx = true} : vector<8x1xf32> -> vector<8x1xf32>
    %306 = vector.broadcast %305 : vector<8x1xf32> to vector<8x8xf32>
    %307 = arith.mulf %302, %306 : vector<8x8xf32>
    %cst_113 = arith.constant dense<0.000000e+00> : vector<8x8xf32>
    %308 = tpu.matmul %307, %293, %cst_113 {dimension_numbers = #tpu.dot_dimension_numbers<[1], [0], [0], [1], [0, 0, 1, 1], [], []>} : vector<8x8xf32>, vector<8x8xf32>, vector<8x8xf32> -> vector<8x8xf32>
    %309 = arith.truncf %308 : vector<8x8xf32> to vector<8x8xbf16>
    %310 = vector.extract_strided_slice %238 {offsets = [8, 0], sizes = [8, 32], strides = [1, 1]} : vector<32x32xbf16> to vector<8x32xbf16>
    %cst_114 = arith.constant dense<0.000000e+00> : vector<8x32xf32>
    %311 = tpu.matmul %309, %310, %cst_114 {dimension_numbers = #tpu.dot_dimension_numbers<[1], [0], [0], [1], [0, 0, 1, 1], [], []>} : vector<8x8xbf16>, vector<8x32xbf16>, vector<8x32xf32> -> vector<8x32xf32>
    %312 = arith.addf %290, %311 : vector<8x32xf32>
    %313 = vector.extract_strided_slice %266 {offsets = [0, 16], sizes = [8, 8], strides = [1, 1]} : vector<8x96xf32> to vector<8x8xf32>
    %314 = vector.extract_strided_slice %266 {offsets = [0, 48], sizes = [8, 8], strides = [1, 1]} : vector<8x96xf32> to vector<8x8xf32>
    %315 = vector.extract_strided_slice %266 {offsets = [0, 80], sizes = [8, 8], strides = [1, 1]} : vector<8x96xf32> to vector<8x8xf32>
    %cst_115 = arith.constant dense<0.000000e+00> : vector<8x8xf32>
    %316 = tpu.matmul %313, %314, %cst_115 {dimension_numbers = #tpu.dot_dimension_numbers<[1], [1], [0], [0], [0, 0, 1, 0], [], []>} : vector<8x8xf32>, vector<8x8xf32>, vector<8x8xf32> -> vector<8x8xf32>
    %cst_116 = arith.constant 0.353553385 : f32
    %317 = vector.broadcast %cst_116 : f32 to vector<8x8xf32>
    %318 = arith.mulf %316, %317 : vector<8x8xf32>
    %319 = arith.addf %318, %42 : vector<8x8xf32>
    %cst_117 = arith.constant dense<0xFF800000> : vector<8xf32>
    %320 = vector.multi_reduction <maximumf>, %319, %cst_117 [1] : vector<8x8xf32> to vector<8xf32>
    %321 = vector.shape_cast %320 : vector<8xf32> to vector<8x1xf32>
    %322 = vector.broadcast %321 : vector<8x1xf32> to vector<8x8xf32>
    %323 = arith.subf %319, %322 : vector<8x8xf32>
    %324 = math.exp %323 : vector<8x8xf32>
    %cst_118 = arith.constant dense<0.000000e+00> : vector<8xf32>
    %325 = vector.multi_reduction <add>, %324, %cst_118 [1] : vector<8x8xf32> to vector<8xf32>
    %326 = vector.shape_cast %325 : vector<8xf32> to vector<8x1xf32>
    %327 = tpu.reciprocal %326 {approx = true} : vector<8x1xf32> -> vector<8x1xf32>
    %328 = vector.broadcast %327 : vector<8x1xf32> to vector<8x8xf32>
    %329 = arith.mulf %324, %328 : vector<8x8xf32>
    %cst_119 = arith.constant dense<0.000000e+00> : vector<8x8xf32>
    %330 = tpu.matmul %329, %315, %cst_119 {dimension_numbers = #tpu.dot_dimension_numbers<[1], [0], [0], [1], [0, 0, 1, 1], [], []>} : vector<8x8xf32>, vector<8x8xf32>, vector<8x8xf32> -> vector<8x8xf32>
    %331 = arith.truncf %330 : vector<8x8xf32> to vector<8x8xbf16>
    %332 = vector.extract_strided_slice %238 {offsets = [16, 0], sizes = [8, 32], strides = [1, 1]} : vector<32x32xbf16> to vector<8x32xbf16>
    %cst_120 = arith.constant dense<0.000000e+00> : vector<8x32xf32>
    %333 = tpu.matmul %331, %332, %cst_120 {dimension_numbers = #tpu.dot_dimension_numbers<[1], [0], [0], [1], [0, 0, 1, 1], [], []>} : vector<8x8xbf16>, vector<8x32xbf16>, vector<8x32xf32> -> vector<8x32xf32>
    %334 = arith.addf %312, %333 : vector<8x32xf32>
    %335 = vector.extract_strided_slice %266 {offsets = [0, 24], sizes = [8, 8], strides = [1, 1]} : vector<8x96xf32> to vector<8x8xf32>
    %336 = vector.extract_strided_slice %266 {offsets = [0, 56], sizes = [8, 8], strides = [1, 1]} : vector<8x96xf32> to vector<8x8xf32>
    %337 = vector.extract_strided_slice %266 {offsets = [0, 88], sizes = [8, 8], strides = [1, 1]} : vector<8x96xf32> to vector<8x8xf32>
    %cst_121 = arith.constant dense<0.000000e+00> : vector<8x8xf32>
    %338 = tpu.matmul %335, %336, %cst_121 {dimension_numbers = #tpu.dot_dimension_numbers<[1], [1], [0], [0], [0, 0, 1, 0], [], []>} : vector<8x8xf32>, vector<8x8xf32>, vector<8x8xf32> -> vector<8x8xf32>
    %cst_122 = arith.constant 0.353553385 : f32
    %339 = vector.broadcast %cst_122 : f32 to vector<8x8xf32>
    %340 = arith.mulf %338, %339 : vector<8x8xf32>
    %341 = arith.addf %340, %46 : vector<8x8xf32>
    %cst_123 = arith.constant dense<0xFF800000> : vector<8xf32>
    %342 = vector.multi_reduction <maximumf>, %341, %cst_123 [1] : vector<8x8xf32> to vector<8xf32>
    %343 = vector.shape_cast %342 : vector<8xf32> to vector<8x1xf32>
    %344 = vector.broadcast %343 : vector<8x1xf32> to vector<8x8xf32>
    %345 = arith.subf %341, %344 : vector<8x8xf32>
    %346 = math.exp %345 : vector<8x8xf32>
    %cst_124 = arith.constant dense<0.000000e+00> : vector<8xf32>
    %347 = vector.multi_reduction <add>, %346, %cst_124 [1] : vector<8x8xf32> to vector<8xf32>
    %348 = vector.shape_cast %347 : vector<8xf32> to vector<8x1xf32>
    %349 = tpu.reciprocal %348 {approx = true} : vector<8x1xf32> -> vector<8x1xf32>
    %350 = vector.broadcast %349 : vector<8x1xf32> to vector<8x8xf32>
    %351 = arith.mulf %346, %350 : vector<8x8xf32>
    %cst_125 = arith.constant dense<0.000000e+00> : vector<8x8xf32>
    %352 = tpu.matmul %351, %337, %cst_125 {dimension_numbers = #tpu.dot_dimension_numbers<[1], [0], [0], [1], [0, 0, 1, 1], [], []>} : vector<8x8xf32>, vector<8x8xf32>, vector<8x8xf32> -> vector<8x8xf32>
    %353 = arith.truncf %352 : vector<8x8xf32> to vector<8x8xbf16>
    %354 = vector.extract_strided_slice %238 {offsets = [24, 0], sizes = [8, 32], strides = [1, 1]} : vector<32x32xbf16> to vector<8x32xbf16>
    %cst_126 = arith.constant dense<0.000000e+00> : vector<8x32xf32>
    %355 = tpu.matmul %353, %354, %cst_126 {dimension_numbers = #tpu.dot_dimension_numbers<[1], [0], [0], [1], [0, 0, 1, 1], [], []>} : vector<8x8xbf16>, vector<8x32xbf16>, vector<8x32xf32> -> vector<8x32xf32>
    %356 = arith.addf %334, %355 : vector<8x32xf32>
    %cst_127 = arith.constant dense<0.000000e+00> : vector<8xf32>
    %357 = vector.multi_reduction <add>, %356, %cst_127 [1] : vector<8x32xf32> to vector<8xf32>
    %358 = vector.shape_cast %357 : vector<8xf32> to vector<8x1xf32>
    %cst_128 = arith.constant 3.200000e+01 : f32
    %359 = vector.broadcast %cst_128 : f32 to vector<8x1xf32>
    %360 = arith.divf %358, %359 : vector<8x1xf32>
    %361 = vector.broadcast %360 : vector<8x1xf32> to vector<8x32xf32>
    %362 = arith.subf %356, %361 : vector<8x32xf32>
    %363 = arith.mulf %362, %362 : vector<8x32xf32>
    %cst_129 = arith.constant dense<0.000000e+00> : vector<8xf32>
    %364 = vector.multi_reduction <add>, %363, %cst_129 [1] : vector<8x32xf32> to vector<8xf32>
    %365 = vector.shape_cast %364 : vector<8xf32> to vector<8x1xf32>
    %cst_130 = arith.constant 3.200000e+01 : f32
    %366 = vector.broadcast %cst_130 : f32 to vector<8x1xf32>
    %367 = arith.divf %365, %366 : vector<8x1xf32>
    %cst_131 = arith.constant 9.99999974E-6 : f32
    %368 = vector.broadcast %cst_131 : f32 to vector<8x1xf32>
    %369 = arith.addf %367, %368 : vector<8x1xf32>
    %370 = math.rsqrt %369 : vector<8x1xf32>
    %371 = vector.broadcast %370 : vector<8x1xf32> to vector<8x32xf32>
    %372 = arith.mulf %362, %371 : vector<8x32xf32>
    %373 = vector.broadcast %227 : vector<1x32xf32> to vector<8x32xf32>
    %374 = arith.mulf %372, %373 : vector<8x32xf32>
    %375 = vector.broadcast %228 : vector<1x32xf32> to vector<8x32xf32>
    %376 = arith.addf %374, %375 : vector<8x32xf32>
    %377 = arith.truncf %376 : vector<8x32xf32> to vector<8x32xbf16>
    %cst_132 = arith.constant dense<0.000000e+00> : vector<8x128xf32>
    %378 = tpu.matmul %377, %240, %cst_132 {dimension_numbers = #tpu.dot_dimension_numbers<[1], [0], [0], [1], [0, 0, 1, 1], [], []>} : vector<8x32xbf16>, vector<32x128xbf16>, vector<8x128xf32> -> vector<8x128xf32>
    %379 = vector.broadcast %234 : vector<1x128xf32> to vector<8x128xf32>
    %380 = arith.addf %378, %379 : vector<8x128xf32>
    %381 = arith.mulf %380, %380 : vector<8x128xf32>
    %382 = arith.mulf %380, %381 : vector<8x128xf32>
    %cst_133 = arith.constant 4.471500e-02 : f32
    %383 = vector.broadcast %cst_133 : f32 to vector<8x128xf32>
    %384 = arith.mulf %383, %382 : vector<8x128xf32>
    %385 = arith.addf %380, %384 : vector<8x128xf32>
    %cst_134 = arith.constant 0.797884583 : f32
    %386 = vector.broadcast %cst_134 : f32 to vector<8x128xf32>
    %387 = arith.mulf %386, %385 : vector<8x128xf32>
    %388 = math.tanh %387 : vector<8x128xf32>
    %cst_135 = arith.constant 1.000000e+00 : f32
    %389 = vector.broadcast %cst_135 : f32 to vector<8x128xf32>
    %390 = arith.addf %389, %388 : vector<8x128xf32>
    %cst_136 = arith.constant 5.000000e-01 : f32
    %391 = vector.broadcast %cst_136 : f32 to vector<8x128xf32>
    %392 = arith.mulf %391, %390 : vector<8x128xf32>
    %393 = arith.mulf %380, %392 : vector<8x128xf32>
    %394 = arith.truncf %393 : vector<8x128xf32> to vector<8x128xbf16>
    %cst_137 = arith.constant dense<0.000000e+00> : vector<8x32xf32>
    %395 = tpu.matmul %394, %242, %cst_137 {dimension_numbers = #tpu.dot_dimension_numbers<[1], [0], [0], [1], [0, 0, 1, 1], [], []>} : vector<8x128xbf16>, vector<128x32xbf16>, vector<8x32xf32> -> vector<8x32xf32>
    %396 = vector.broadcast %230 : vector<1x32xf32> to vector<8x32xf32>
    %397 = arith.addf %395, %396 : vector<8x32xf32>
    %398 = arith.addf %397, %356 : vector<8x32xf32>
    %cst_138 = arith.constant dense<0.000000e+00> : vector<8xf32>
    %399 = vector.multi_reduction <add>, %398, %cst_138 [1] : vector<8x32xf32> to vector<8xf32>
    %400 = vector.shape_cast %399 : vector<8xf32> to vector<8x1xf32>
    %cst_139 = arith.constant 3.200000e+01 : f32
    %401 = vector.broadcast %cst_139 : f32 to vector<8x1xf32>
    %402 = arith.divf %400, %401 : vector<8x1xf32>
    %403 = vector.broadcast %402 : vector<8x1xf32> to vector<8x32xf32>
    %404 = arith.subf %398, %403 : vector<8x32xf32>
    %405 = arith.mulf %404, %404 : vector<8x32xf32>
    %cst_140 = arith.constant dense<0.000000e+00> : vector<8xf32>
    %406 = vector.multi_reduction <add>, %405, %cst_140 [1] : vector<8x32xf32> to vector<8xf32>
    %407 = vector.shape_cast %406 : vector<8xf32> to vector<8x1xf32>
    %cst_141 = arith.constant 3.200000e+01 : f32
    %408 = vector.broadcast %cst_141 : f32 to vector<8x1xf32>
    %409 = arith.divf %407, %408 : vector<8x1xf32>
    %cst_142 = arith.constant 9.99999974E-6 : f32
    %410 = vector.broadcast %cst_142 : f32 to vector<8x1xf32>
    %411 = arith.addf %409, %410 : vector<8x1xf32>
    %412 = math.rsqrt %411 : vector<8x1xf32>
    %413 = vector.broadcast %412 : vector<8x1xf32> to vector<8x32xf32>
    %414 = arith.mulf %404, %413 : vector<8x32xf32>
    %415 = vector.broadcast %3 : vector<1x32xf32> to vector<8x32xf32>
    %416 = arith.mulf %414, %415 : vector<8x32xf32>
    %417 = vector.broadcast %4 : vector<1x32xf32> to vector<8x32xf32>
    %418 = arith.addf %416, %417 : vector<8x32xf32>
    %c0_143 = arith.constant 0 : index
    %c0_144 = arith.constant 0 : index
    %419 = vector.load %arg9[%c0_143, %c0_144] : memref<8x32xf32, #tpu.memory_space<vmem>>, vector<8x32xf32>
    tpu.vector_store %arg9[%c0_143, %c0_144], %418 {strides = array<i32>} : memref<8x32xf32, #tpu.memory_space<vmem>>, vector<8x32xf32>,
    return
  }
}

</mosaic_0001>

<bundles_post_ra>
// kernel: bloom_forward.1
= control target key start
LH: loop header
LB: loop body
LE: loop exit
PB: predicated region body
PF: predicated region fallthrough
CT: control target
= control target key end

     0   :  { %vm36_vm0 = vcmask 261120   ;;  %s3482_s0 = inlined_call_operand.vmem [shape: f32[8,32], index: 0, kind: input, shape index: {}]   ;;  %s3483_s1 = inlined_call_operand.vmem [shape: f32[4,32], index: 1, kind: input, shape index: {}]   ;;  %s3484_s2 = inlined_call_operand.vmem [shape: f32[2,8,32], index: 2, kind: input, shape index: {}]   ;;  %s3485_s3 = inlined_call_operand.vmem [shape: f32[2,1,96], index: 3, kind: input, shape index: {}]   ;;  %s3486_s4 = inlined_call_operand.vmem [shape: f32[2,1,128], index: 4, kind: input, shape index: {}]   ;;  %s3487_s5 = inlined_call_operand.vmem [shape: bf16[2,32,96], index: 5, kind: input, shape index: {}]   ;;  %s3488_s6 = inlined_call_operand.vmem [shape: bf16[2,32,32], index: 6, kind: input, shape index: {}]   ;;  %s3489_s7 = inlined_call_operand.vmem [shape: bf16[2,32,128], index: 7, kind: input, shape index: {}]   ;;  %s3490_s8 = inlined_call_operand.vmem [shape: bf16[2,128,32], index: 8, kind: input, shape index: {}]   ;;  %s3491_s9 = inlined_call_operand.hbm [shape: f32[8,32], index: 9, kind: output, shape index: {}]  }
   0x1   :  { %v35_v0 = vld [vmem:[%s3482_s0] sm:$0xff] }
   0x2   :  { %v37_v1 = vsel %vm36_vm0, %v35_v0, 0.0 }
   0x3   :  { %38 = vadd.xlane.f32.xlu0 %v37_v1 }
   0x4   :  { %14 = vsyncpa [#allocation3], 0  ;;  %v51_v10 = vlaneseq  ;;  %v34_v13 = vld [vmem:[%s3483_s1] sm:$0xf]  ;;  %v2846_v27 = vld [vmem:[%s3487_s5 + $0x8] sm:$0xff]   ;;  %v2941_v28 = vmov 0.0  }
   0x5   :  { %2632 = vmatprep.subr.bf16.mxu1 %v2941_v28  ;;  %vm2942_vm1 = vmmov 0   ;;  %v2847_v29 = vld [vmem:[%s3487_s5] sm:$0xff]   ;;  %2656 = vmatprep.subr.mxu0 %v2941_v28  ;;  %s2943_s20 = smov 120   ;;  %s2944_s21 = smov 88   ;;  %vm200_vm2 = vcmask 64512   ;;  %vm368_vm4 = vcmask 1043456  }
   0x6   :  { %v3010_v11 = vshrl.u32 %v51_v10, 7  ;;  %2636 = vmatprep.mubr.msk.bf16.mxu1 %vm2942_vm1, %v2941_v28  ;;  %2633 = vmatpush3.bf16.msra.mxu1 %v2846_v27  ;;  %v3046_v33 = vld [vmem:[%s3484_s2] sm:$0xff]  ;;  %v3069_v49 = vand.u32 127, %v51_v10  ;;  %s2945_s22 = smov 80   ;;  %s2946_s23 = smov 112  }
   0x7   :  { %2634 = vmatprep.subr.bf16.mxu1 %v2941_v28  ;;  %2658 = vmatprep.mubr.msk.f32.mxu0 %vm2942_vm1, %v2941_v28  ;;  %v2459_v41 = vld [vmem:[%s3485_s3] ss:$0 sm:$0xff]  ;;  %s2947_s24 = smov 56   ;;  %s2948_s25 = smov 48  }
   0x8   :  { %v3013_v12 = vsub.s32 0, %v3010_v11  ;;  %v3019_v14 = vsub.s32 1, %v3010_v11  ;;  %v65_v50 = vsub.s32 %v3069_v49, %v3010_v11  ;;  %vm67_vm3 = vcmp.le.s32.totalorder %v3069_v49, %v3010_v11  ;;  %s2949_s26 = smov 72   ;;  %s2950_s27 = smov 96  }
   0x9   :  { %s2951_s28 = smov 104   ;;  %s2952_s29 = smov 64  }
   0xa   :  { %v54_v15 = vrot.slane %v34_v13, %v3013_v12  ;;  %v59_v18 = vrot.slane %v34_v13, %v3019_v14  ;;  %2635 = vmatpush3.bf16.msra.mxu1 %v2847_v29  ;;  %v123_v34 = vrot.slane %v3046_v33, %v3013_v12  ;;  %v128_v37 = vrot.slane %v3046_v33, %v3019_v14  ;;  %s2953_s30 = smov 40  }
   0xb   :  { %2640 = vmatprep.subr.mxu1 %v2941_v28  ;;  %v3073_v51 = vcvt.s32.f32 %v65_v50 }
   0xd   :  { %v70_v52 = vmul.f32 0.0625, %v3073_v51 }
   0xf   :  { %v3081_v54 = vsel %vm67_vm3, %v70_v52, -1e+30 }
  0x8c   :  { %v39_v2 = vpop.xlane.xlu0 %38 }
  0x8d   :  { %v41_v3 = vmul.f32 0.03125, %v39_v2 }
  0x8f   :  { %v42_v4 = vsub.f32 %v35_v0, %v41_v3 }
  0x91   :  { %v43_v5 = vmul.f32 %v42_v4, %v42_v4 }
  0x93   :  { %v44_v6 = vsel %vm36_vm0, %v43_v5, 0.0 }
  0x94   :  { %45 = vadd.xlane.f32.xlu0 %v44_v6 }
 0x11d   :  { %v46_v7 = vpop.xlane.xlu0 %45 }
 0x11e   :  { %v47_v8 = vmul.f32 0.03125, %v46_v7  ;;  %v72_v7 = vmul.f32 0.015625, %v3073_v51 }
 0x120   :  { %v48_v9 = vadd.f32 1e-05, %v47_v8  ;;  %v3107_v10 = vsel %vm67_vm3, %v72_v7, -1e+30  ;;  %v84_v7 = vld [vmem:[%s3488_s6 + $0x4] sm:$0xf] }
 0x122   :  { %2870 = vrsqrt.f32 %v48_v9 }
 0x12f   :  { %v2871_v16 = vpop.eup %2870 }
 0x130   :  { %v50_v17 = vmul.f32 %v2871_v16, %v42_v4 }
 0x132   :  { %v55_v19 = vmul.f32 %v54_v15, %v50_v17 }
 0x134   :  { %v3023_v20 = vadd.f32 %v59_v18, %v55_v19 }
 0x136   :  { %v107_v21 = vsel %vm36_vm0, %v3023_v20, 0.0 }
 0x137   :  { %108 = vadd.xlane.f32.xlu1 %v107_v21 }
 0x1c0   :  { %v109_v22 = vpop.xlane.xlu1 %108 }
 0x1c1   :  { %v110_v23 = vmul.f32 0.03125, %v109_v22 }
 0x1c3   :  { %v111_v24 = vsub.f32 %v3023_v20, %v110_v23 }
 0x1c5   :  { %v112_v25 = vmul.f32 %v111_v24, %v111_v24 }
 0x1c7   :  { %v113_v26 = vsel %vm36_vm0, %v112_v25, 0.0 }
 0x1c8   :  { %114 = vadd.xlane.f32.xlu1 %v113_v26 }
 0x251   :  { %v115_v30 = vpop.xlane.xlu1 %114 }
 0x252   :  { %v116_v31 = vmul.f32 0.03125, %v115_v30 }
 0x254   :  { %v117_v32 = vadd.f32 1e-05, %v116_v31 }
 0x256   :  { %2872 = vrsqrt.f32 %v117_v32  ;;  %v68_v32 = vmul.f32 0.25, %v3073_v51 }
 0x263   :  { %v2873_v35 = vpop.eup %2872 }
 0x264   :  { %v119_v36 = vmul.f32 %v2873_v35, %v111_v24  ;;  %v3139_v35 = vsel %vm67_vm3, %v68_v32, -1e+30 }
 0x266   :  { %v124_v38 = vmul.f32 %v123_v34, %v119_v36 }
 0x268   :  { %v129_v39 = vadd.f32 %v128_v37, %v124_v38 }
 0x26a   :  { %v130_v40 = vpack.c.bf16 %v129_v39, %v129_v39 }
 0x26c   :  { %2637 = vmatmul.mubr.msk.bf16.vlgmr.msra.gmra.mxu1 %vm36_vm0, %v130_v40 }
 0x26d   :  { %2642 = vmatprep.mubr.msk.f32.mxu1 %vm2942_vm1, %v2941_v28 }
 0x32c   :  { %v186_v42 = vpop.f32.mrf.mxu1 }
 0x32d   :  { %v3058_v43 = vadd.f32 %v2459_v41, %v186_v42  ;;  %v74_v41 = vmul.f32 0.00390625, %v3073_v51 }
 0x32e   :  { %v2638_v44 = vpop.f32.mrf.mxu1 }
 0x32f   :  { %413 = vrot.lane.b32.xlu1 %v3058_v43, %s2943_s20  ;;  %415 = vrot.lane.b32.xlu0 %v3058_v43, %s2944_s21 }
 0x330   :  { %v189_v45 = vpop.f32.mrf.mxu1 }
 0x331   :  { %v3149_v45 = vsel %vm67_vm3, %v74_v41, -1e+30 }
 0x332   :  { %v2639_v46 = vpop.f32.mrf.mxu1 }
 0x3a1   :  { %v416_v47 = vpop.permute.xlu0 %415  ;;  %v414_v48 = vpop.permute.xlu1 %413 }
 0x3a2   :  { %2657 = vmatpush3.xpose.msk.msra.mxu0 %vm200_vm2, %v416_v47 }
 0x3a3   :  { %2661 = vmatprep.subr.mxu0 %v2941_v28 }
 0x3a5   :  { %2659 = vmatmul.mubr.msk.f32.vlgmr.msra.gmra.mxu0 %vm200_vm2, %v414_v48 }
 0x3a6   :  { %2663 = vmatprep.mubr.msk.f32.mxu0 %vm2942_vm1, %v2941_v28 }
 0x465   :  { %v487_v53 = vpop.f32.mrf.mxu0 }
 0x466   :  { %v491_v55 = vmul.f32 0.35355338, %v487_v53 }
 0x467   :  { %v2660_v56 = vpop.f32.mrf.mxu0 }
 0x468   :  { %v492_v57 = vadd.f32 %v491_v55, %v3081_v54 }
 0x46a   :  { %v493_v58 = vsel %vm200_vm2, %v492_v57, -inf }
 0x46b   :  { %494 = vmax.xlane.f32.xlu1 %v493_v58 }
 0x47c   :  { %630 = vrot.lane.b32.xlu1 %v3058_v43, %s2945_s22 }
 0x480   :  { %628 = vrot.lane.b32.xlu1 %v3058_v43, %s2946_s23 }
 0x4f4   :  { %v495_v59 = vpop.xlane.xlu1 %494 }
 0x4f5   :  { %v496_v60 = vsub.f32 %v492_v57, %v495_v59 }
 0x4f7   :  { %v497_v61 = vmul.f32 1.442695, %v496_v60 }
 0x4f8   :  { %v631_v3 = vpop.permute.xlu1 %630 }
 0x4f9   :  { %2874 = vpow2.f32 %v497_v61 }
 0x4fc   :  { %v629_v5 = vpop.permute.xlu1 %628 }
 0x506   :  { %v2875_v62 = vpop.eup %2874 }
 0x507   :  { %v499_v63 = vsel %vm200_vm2, %v2875_v62, 0.0 }
 0x508   :  { %500 = vadd.xlane.f32.xlu0 %v499_v63 }
 0x51e   :  { %504 = vrot.lane.b32.xlu0 %v3058_v43, %s2947_s24 }
 0x591   :  { %v501_v0 = vpop.xlane.xlu0 %500 }
 0x592   :  { %2876 = vrcp.f32 %v501_v0 }
 0x595   :  { %v505_v1 = vpop.permute.xlu0 %504 }
 0x596   :  { %2662 = vmatpush3.msra.mxu0 %v505_v1 }
 0x597   :  { %2672 = vmatprep.subr.mxu0 %v2941_v28 }
 0x59f   :  { %v2877_v2 = vpop.eup %2876 }
 0x5a0   :  { %v503_v4 = vmul.f32 %v2877_v2, %v2875_v62 }
 0x5a2   :  { %2664 = vmatmul.mubr.msk.f32.vlgmr.msra.gmra.mxu0 %vm200_vm2, %v503_v4 }
 0x5a3   :  { %2673 = vmatpush3.xpose.msk.msra.mxu0 %vm200_vm2, %v631_v3  ;;  %2674 = vmatprep.mubr.msk.f32.mxu0 %vm2942_vm1, %v2941_v28 }
 0x5a4   :  { %2677 = vmatprep.subr.mxu0 %v2941_v28 }
 0x5a6   :  { %2675 = vmatmul.mubr.msk.f32.vlgmr.msra.gmra.mxu0 %vm200_vm2, %v629_v5 }
 0x5a7   :  { %2679 = vmatprep.mubr.msk.f32.mxu0 %vm2942_vm1, %v2941_v28 }
 0x662   :  { %v3101_v6 = vpop.f32.mrf.mxu0 }
 0x664   :  { %v2665_v8 = vpop.f32.mrf.mxu0 }
 0x666   :  { %v702_v9 = vpop.f32.mrf.mxu0 }
 0x667   :  { %v706_v13 = vmul.f32 0.35355338, %v702_v9 }
 0x668   :  { %v2676_v15 = vpop.f32.mrf.mxu0 }
 0x669   :  { %v707_v16 = vadd.f32 %v706_v13, %v3107_v10  ;;  %v585_v13 = vsel %vm368_vm4, %v84_v7, 0 }
 0x66b   :  { %v708_v17 = vsel %vm200_vm2, %v707_v16, -inf }
 0x66c   :  { %709 = vmax.xlane.f32.xlu1 %v708_v17  ;;  %v580_v17 = vpack.c.bf16 %v3101_v6, %v3101_v6 }
 0x67d   :  { %719 = vrot.lane.b32.xlu1 %v3058_v43, %s2948_s25 }
 0x681   :  { %845 = vrot.lane.b32.xlu1 %v3058_v43, %s2949_s26 }
 0x6f5   :  { %v710_v18 = vpop.xlane.xlu1 %709 }
 0x6f6   :  { %v711_v19 = vsub.f32 %v707_v16, %v710_v18  ;;  %v85_v16 = vld [vmem:[%s3488_s6 + $0x8] sm:$0xf] }
 0x6f7   :  { %v800_v18 = vsel %vm368_vm4, %v85_v16, 0  ;;  %v2853_v16 = vld [vmem:[%s3490_s8 + $0x20] sm:$0xff]  }
 0x6f8   :  { %v712_v21 = vmul.f32 1.442695, %v711_v19 }
 0x6f9   :  { %v720_v22 = vpop.permute.xlu1 %719 }
 0x6fa   :  { %2878 = vpow2.f32 %v712_v21  ;;  %2678 = vmatpush3.msra.mxu0 %v720_v22  ;;  %v86_v21 = vld [vmem:[%s3488_s6 + $0xc] sm:$0xf] }
 0x6fb   :  { %2688 = vmatprep.subr.mxu0 %v2941_v28  ;;  %v1015_v6 = vsel %vm368_vm4, %v86_v21, 0  ;;  %v2857_v21 = vld [vmem:[%s3490_s8] sm:$0xff]  }
 0x6fd   :  { %v846_v30 = vpop.permute.xlu1 %845 }
 0x707   :  { %v2879_v23 = vpop.eup %2878 }
 0x708   :  { %v714_v24 = vsel %vm200_vm2, %v2879_v23, 0.0 }
 0x709   :  { %715 = vadd.xlane.f32.xlu0 %v714_v24 }
 0x71f   :  { %198 = vrot.lane.b32.xlu0 %v3058_v43, %s2950_s27 }
 0x723   :  { %843 = vrot.lane.b32.xlu0 %v3058_v43, %s2951_s28 }
 0x792   :  { %v716_v25 = vpop.xlane.xlu0 %715 }
 0x793   :  { %2880 = vrcp.f32 %v716_v25 }
 0x796   :  { %v199_v26 = vpop.permute.xlu0 %198 }
 0x797   :  { %2641 = vmatpush3.xpose.msk.msra.mxu1 %vm200_vm2, %v199_v26 }
 0x798   :  { %2645 = vmatprep.subr.mxu1 %v2941_v28 }
 0x79a   :  { %2643 = vmatmul.mubr.msk.f32.vlgmr.msra.gmra.mxu1 %vm200_vm2, %v3058_v43  ;;  %v844_v31 = vpop.permute.xlu0 %843 }
 0x79b   :  { %2647 = vmatprep.mubr.msk.f32.mxu1 %vm2942_vm1, %v2941_v28 }
 0x7a0   :  { %v2881_v27 = vpop.eup %2880 }
 0x7a1   :  { %v718_v29 = vmul.f32 %v2881_v27, %v2879_v23 }
 0x7a3   :  { %2680 = vmatmul.mubr.msk.f32.vlgmr.msra.gmra.mxu0 %vm200_vm2, %v718_v29 }
 0x7a4   :  { %2689 = vmatpush3.xpose.msk.msra.mxu0 %vm200_vm2, %v846_v30  ;;  %2690 = vmatprep.mubr.msk.f32.mxu0 %vm2942_vm1, %v2941_v28 }
 0x7a5   :  { %2693 = vmatprep.subr.mxu0 %v2941_v28 }
 0x7a7   :  { %2691 = vmatmul.mubr.msk.f32.vlgmr.msra.gmra.mxu0 %vm200_vm2, %v844_v31  ;;  %v194_v31 = vsub.s32 4, %v3010_v11 }
 0x7a8   :  { %2695 = vmatprep.mubr.msk.f32.mxu0 %vm2942_vm1, %v2941_v28 }
 0x85a   :  { %v271_v34 = vpop.f32.mrf.mxu1 }
 0x85b   :  { %v275_v36 = vmul.f32 0.35355338, %v271_v34 }
 0x85c   :  { %v2644_v37 = vpop.f32.mrf.mxu1 }
 0x85d   :  { %v276_v38 = vadd.f32 %v275_v36, %v3139_v35  ;;  %v195_v36 = vrot.slane %v3046_v33, %v194_v31 }
 0x85f   :  { %v277_v39 = vsel %vm200_vm2, %v276_v38, -inf }
 0x860   :  { %278 = vmax.xlane.f32.xlu1 %v277_v39  ;;  %v196_v39 = vadd.f32 %v195_v36, %v3023_v20 }
 0x863   :  { %v3143_v40 = vpop.f32.mrf.mxu0 }
 0x864   :  { %v795_v23 = vpack.c.bf16 %v3143_v40, %v3143_v40 }
 0x865   :  { %v2681_v42 = vpop.f32.mrf.mxu0 }
 0x867   :  { %v917_v44 = vpop.f32.mrf.mxu0 }
 0x868   :  { %v921_v46 = vmul.f32 0.35355338, %v917_v44 }
 0x869   :  { %v2692_v47 = vpop.f32.mrf.mxu0 }
 0x86a   :  { %v922_v48 = vadd.f32 %v921_v46, %v3149_v45 }
 0x86c   :  { %v923_v50 = vsel %vm200_vm2, %v922_v48, -inf }
 0x86d   :  { %924 = vmax.xlane.f32.xlu0 %v923_v50 }
 0x871   :  { %288 = vrot.lane.b32.xlu1 %v3058_v43, %s2952_s29 }
 0x8e9   :  { %v279_v52 = vpop.xlane.xlu1 %278 }
 0x8ea   :  { %v280_v51 = vsub.f32 %v276_v38, %v279_v52 }
 0x8ec   :  { %v281_v53 = vmul.f32 1.442695, %v280_v51 }
 0x8ed   :  { %v289_v55 = vpop.permute.xlu1 %288 }
 0x8ee   :  { %2882 = vpow2.f32 %v281_v53  ;;  %2646 = vmatpush3.msra.mxu1 %v289_v55 }
 0x8ef   :  { %2650 = vmatprep.subr.bf16.mxu1 %v2941_v28 }
 0x8f6   :  { %v925_v49 = vpop.xlane.xlu0 %924 }
 0x8f7   :  { %v926_v56 = vsub.f32 %v922_v48, %v925_v49 }
 0x8f9   :  { %v927_v57 = vmul.f32 1.442695, %v926_v56 }
 0x8fb   :  { %v2883_v58 = vpop.eup %2882  ;;  %2884 = vpow2.f32 %v927_v57 }
 0x8fc   :  { %v283_v59 = vsel %vm200_vm2, %v2883_v58, 0.0 }
 0x8fd   :  { %284 = vadd.xlane.f32.xlu0 %v283_v59  ;;  %v2848_v59 = vld [vmem:[%s3489_s7 + $0x8] sm:$0xff]  }
 0x908   :  { %v2885_v60 = vpop.eup %2884 }
 0x909   :  { %v929_v61 = vsel %vm200_vm2, %v2885_v60, 0.0 }
 0x90a   :  { %930 = vadd.xlane.f32.xlu0 %v929_v61 }
 0x920   :  { %934 = vrot.lane.b32.xlu0 %v3058_v43, %s2953_s30  ;;  %v83_v43 = vld [vmem:[%s3488_s6] sm:$0xf] }
 0x921   :  { %v370_v5 = vsel %vm368_vm4, %v83_v43, 0 }
 0x986   :  { %v285_v62 = vpop.xlane.xlu0 %284 }
 0x987   :  { %2886 = vrcp.f32 %v285_v62 }
 0x993   :  { %v931_v63 = vpop.xlane.xlu0 %930 }
 0x994   :  { %v2887_v0 = vpop.eup %2886  ;;  %2888 = vrcp.f32 %v931_v63 }
 0x995   :  { %v287_v1 = vmul.f32 %v2887_v0, %v2883_v58  ;;  %v3223_v0 = vsub.s32 2, %v3010_v11 }
 0x997   :  { %v935_v2 = vpop.permute.xlu0 %934  ;;  %2648 = vmatmul.mubr.msk.f32.vlgmr.msra.gmra.mxu1 %vm200_vm2, %v287_v1  ;;  %v3226_v1 = vsub.s32 3, %v3010_v11 }
 0x998   :  { %2694 = vmatpush3.msra.mxu0 %v935_v2  ;;  %2652 = vmatprep.mubr.msk.bf16.mxu1 %vm2942_vm1, %v2941_v28  ;;  %v1074_v2 = vrot.slane %v3046_v33, %v3223_v0 }
 0x999   :  { %2704 = vmatprep.subr.bf16.mxu0 %v2941_v28  ;;  %2651 = vmatpush3.bf16.msra.mxu1 %v370_v5  ;;  %v1079_v43 = vrot.slane %v3046_v33, %v3226_v1 }
 0x99a   :  { %2666 = vmatprep.subr.bf16.mxu1 %v2941_v28 }
 0x9a1   :  { %v2889_v3 = vpop.eup %2888 }
 0x9a2   :  { %v933_v4 = vmul.f32 %v2889_v3, %v2885_v60  ;;  %v2849_v60 = vld [vmem:[%s3489_s7] sm:$0xff]  }
 0x9a4   :  { %2696 = vmatmul.mubr.msk.f32.vlgmr.msra.gmra.mxu0 %vm200_vm2, %v933_v4 }
 0x9a5   :  { %2708 = vmatprep.mubr.msk.bf16.mxu0 %vm2942_vm1, %v2941_v28  ;;  %2705 = vmatpush3.bf16.msra.mxu0 %v2848_v59 }
 0x9a6   :  { %2706 = vmatprep.subr.bf16.mxu0 %v2941_v28 }
 0x9a9   :  { %2707 = vmatpush3.bf16.msra.mxu0 %v2849_v60 }
 0x9aa   :  { %2732 = vmatprep.subr.bf16.mxu0 %v2941_v28 }
 0xa57   :  { %v360_v8 = vpop.f32.mrf.mxu1 }
 0xa58   :  { %v364_v9 = vpack.c.bf16 %v360_v8, %v360_v8 }
 0xa59   :  { %v2649_v15 = vpop.f32.mrf.mxu1 }
 0xa5a   :  { %2653 = vmatmul.mubr.msk.bf16.vlgmr.msra.gmra.mxu1 %vm200_vm2, %v364_v9  ;;  %v2850_v9 = vld [vmem:[%s3490_s8 + $0x38] sm:$0xff]   ;;  %v2852_v15 = vld [vmem:[%s3490_s8 + $0x28] sm:$0xff]  }
 0xa5b   :  { %2667 = vmatpush3.bf16.msra.mxu1 %v585_v13  ;;  %2668 = vmatprep.mubr.msk.bf16.mxu1 %vm2942_vm1, %v2941_v28  ;;  %v2851_v13 = vld [vmem:[%s3490_s8 + $0x30] sm:$0xff]  }
 0xa5c   :  { %2682 = vmatprep.subr.bf16.mxu1 %v2941_v28 }
 0xa62   :  { %2669 = vmatmul.mubr.msk.bf16.vlgmr.msra.gmra.mxu1 %vm200_vm2, %v580_v17  ;;  %v2854_v17 = vld [vmem:[%s3490_s8 + $0x18] sm:$0xff]  }
 0xa63   :  { %2683 = vmatpush3.bf16.msra.mxu1 %v800_v18  ;;  %2684 = vmatprep.mubr.msk.bf16.mxu1 %vm2942_vm1, %v2941_v28  ;;  %v2855_v18 = vld [vmem:[%s3490_s8 + $0x10] sm:$0xff]  }
 0xa64   :  { %v1006_v19 = vpop.f32.mrf.mxu0  ;;  %2698 = vmatprep.subr.bf16.mxu1 %v2941_v28 }
 0xa65   :  { %v1010_v24 = vpack.c.bf16 %v1006_v19, %v1006_v19  ;;  %v2856_v19 = vld [vmem:[%s3490_s8 + $0x8] sm:$0xff]  }
 0xa66   :  { %v2697_v22 = vpop.f32.mrf.mxu0 }
 0xa67   :  { %v2479_v22 = vld [vmem:[%s3486_s4] ss:$0 sm:$0xff] }
 0xa6a   :  { %2685 = vmatmul.mubr.msk.bf16.vlgmr.msra.gmra.mxu1 %vm200_vm2, %v795_v23 }
 0xa6b   :  { %2699 = vmatpush3.bf16.msra.mxu1 %v1015_v6  ;;  %2700 = vmatprep.mubr.msk.bf16.mxu1 %vm2942_vm1, %v2941_v28 }
 0xa6c   :  { %2712 = vmatprep.subr.bf16.mxu1 %v2941_v28 }
 0xa72   :  { %2701 = vmatmul.mubr.msk.bf16.vlgmr.msra.gmra.mxu1 %vm200_vm2, %v1010_v24 }
 0xa73   :  { %2728 = vmatprep.mubr.msk.bf16.mxu1 %vm2942_vm1, %v2941_v28  ;;  %2713 = vmatpush3.bf16.msra.mxu1 %v2850_v9 }
 0xa74   :  { %2714 = vmatprep.subr.bf16.mxu1 %v2941_v28 }
 0xa77   :  { %2715 = vmatpush3.bf16.msra.mxu1 %v2851_v13 }
 0xa78   :  { %2716 = vmatprep.subr.bf16.mxu1 %v2941_v28 }
 0xa7b   :  { %2717 = vmatpush3.bf16.msra.mxu1 %v2852_v15 }
 0xa7c   :  { %2718 = vmatprep.subr.bf16.mxu1 %v2941_v28 }
 0xa7f   :  { %2719 = vmatpush3.bf16.msra.mxu1 %v2853_v16 }
 0xa80   :  { %2720 = vmatprep.subr.bf16.mxu1 %v2941_v28 }
 0xa83   :  { %2721 = vmatpush3.bf16.msra.mxu1 %v2854_v17 }
 0xa84   :  { %2722 = vmatprep.subr.bf16.mxu1 %v2941_v28 }
 0xa87   :  { %2723 = vmatpush3.bf16.msra.mxu1 %v2855_v18 }
 0xa88   :  { %2724 = vmatprep.subr.bf16.mxu1 %v2941_v28 }
 0xa8b   :  { %2725 = vmatpush3.bf16.msra.mxu1 %v2856_v19 }
 0xa8c   :  { %2726 = vmatprep.subr.bf16.mxu1 %v2941_v28 }
 0xa8f   :  { %2727 = vmatpush3.bf16.msra.mxu1 %v2857_v21 }
 0xa90   :  { %2761 = vmatprep.subr.mxu1 %v2941_v28 }
 0xb1a   :  { %v406_v25 = vpop.f32.mrf.mxu1 }
 0xb1b   :  { %v412_v41 = vadd.f32 %v406_v25, %v196_v39 }
 0xb1c   :  { %v2654_v26 = vpop.f32.mrf.mxu1 }
 0xb1e   :  { %v409_v27 = vpop.f32.mrf.mxu1 }
 0xb20   :  { %v2655_v29 = vpop.f32.mrf.mxu1 }
 0xb22   :  { %v621_v30 = vpop.f32.mrf.mxu1 }
 0xb23   :  { %v627_v44 = vadd.f32 %v621_v30, %v412_v41  ;;  %v1155_v41 = vsub.s32 5, %v3010_v11 }
 0xb24   :  { %v2670_v32 = vpop.f32.mrf.mxu1 }
 0xb26   :  { %v624_v34 = vpop.f32.mrf.mxu1 }
 0xb28   :  { %v2671_v37 = vpop.f32.mrf.mxu1 }
 0xb2a   :  { %v836_v38 = vpop.f32.mrf.mxu1 }
 0xb2b   :  { %v842_v47 = vadd.f32 %v836_v38, %v627_v44 }
 0xb2c   :  { %v2686_v40 = vpop.f32.mrf.mxu1 }
 0xb2e   :  { %v839_v42 = vpop.f32.mrf.mxu1 }
 0xb2f   :  { %v1156_v42 = vrot.slane %v3046_v33, %v1155_v41  ;;  %v2858_v33 = vld [vmem:[%s3487_s5 + $0x18] sm:$0xff]  }
 0xb30   :  { %v2687_v46 = vpop.f32.mrf.mxu1 }
 0xb32   :  { %v1051_v48 = vpop.f32.mrf.mxu1 }
 0xb33   :  { %v3208_v50 = vadd.f32 %v1051_v48, %v842_v47 }
 0xb34   :  { %v2702_v52 = vpop.f32.mrf.mxu1 }
 0xb35   :  { %v1058_v51 = vsel %vm36_vm0, %v3208_v50, 0.0 }
 0xb36   :  { %1059 = vadd.xlane.f32.xlu1 %v1058_v51  ;;  %v1054_v53 = vpop.f32.mrf.mxu1 }
 0xb38   :  { %v2703_v55 = vpop.f32.mrf.mxu1 }
 0xbbf   :  { %v1060_v49 = vpop.xlane.xlu1 %1059 }
 0xbc0   :  { %v1061_v56 = vmul.f32 0.03125, %v1060_v49 }
 0xbc2   :  { %v1062_v20 = vsub.f32 %v3208_v50, %v1061_v56 }
 0xbc4   :  { %v1063_v57 = vmul.f32 %v1062_v20, %v1062_v20 }
 0xbc6   :  { %v1064_v58 = vsel %vm36_vm0, %v1063_v57, 0.0 }
 0xbc7   :  { %1065 = vadd.xlane.f32.xlu0 %v1064_v58 }
 0xc50   :  { %v1066_v61 = vpop.xlane.xlu0 %1065 }
 0xc51   :  { %v1067_v62 = vmul.f32 0.03125, %v1066_v61  ;;  %v3294_v61 = vld [vmem:[%s3484_s2 + $0x8] sm:$0xff] }
 0xc53   :  { %v1068_v63 = vadd.f32 1e-05, %v1067_v62  ;;  %v1300_v62 = vrot.slane %v3294_v61, %v3013_v12 }
 0xc55   :  { %2890 = vrsqrt.f32 %v1068_v63 }
 0xc62   :  { %v2891_v3 = vpop.eup %2890 }
 0xc63   :  { %v1070_v4 = vmul.f32 %v2891_v3, %v1062_v20  ;;  %v1305_v3 = vrot.slane %v3294_v61, %v3019_v14 }
 0xc65   :  { %v1075_v5 = vmul.f32 %v1074_v2, %v1070_v4 }
 0xc67   :  { %v1080_v7 = vadd.f32 %v1079_v43, %v1075_v5 }
 0xc69   :  { %v1081_v8 = vpack.c.bf16 %v1080_v7, %v1080_v7  ;;  %v2522_v7 = vld [vmem:[%s3485_s3 + $0x1] ss:$0 sm:$0xff] }
 0xc6b   :  { %2709 = vmatmul.mubr.msk.bf16.vlgmr.msra.gmra.mxu0 %vm36_vm0, %v1081_v8 }
 0xc6c   :  { %2736 = vmatprep.mubr.msk.bf16.mxu0 %vm2942_vm1, %v2941_v28  ;;  %2733 = vmatpush3.bf16.msra.mxu0 %v2858_v33 }
 0xc6d   :  { %2734 = vmatprep.subr.bf16.mxu0 %v2941_v28 }
 0xd2b   :  { %v1137_v23 = vpop.f32.mrf.mxu0 }
 0xd2c   :  { %v1138_v6 = vadd.f32 %v2479_v22, %v1137_v23 }
 0xd2d   :  { %v2710_v24 = vpop.f32.mrf.mxu0 }
 0xd2e   :  { %v1143_v25 = vmul.f32 %v1138_v6, %v1138_v6 }
 0xd2f   :  { %v1140_v26 = vpop.f32.mrf.mxu0 }
 0xd30   :  { %v1144_v27 = vmul.f32 %v1143_v25, %v1138_v6 }
 0xd31   :  { %v2711_v29 = vpop.f32.mrf.mxu0 }
 0xd32   :  { %v1145_v30 = vmul.f32 0.044715, %v1144_v27 }
 0xd34   :  { %v1146_v32 = vadd.f32 %v1145_v30, %v1138_v6 }
 0xd36   :  { %v1147_v34 = vmul.f32 0.7978846, %v1146_v32 }
 0xd38   :  { %2892 = vtanh.f32 %v1147_v34 }
 0xd45   :  { %v2893_v36 = vpop.eup %2892 }
 0xd46   :  { %v1149_v37 = vadd.f32 1.0, %v2893_v36 }
 0xd48   :  { %v1150_v38 = vmul.f32 0.5, %v1149_v37 }
 0xd4a   :  { %v1151_v39 = vmul.f32 %v1150_v38, %v1138_v6 }
 0xd4c   :  { %v1152_v40 = vpack.c.bf16 %v1151_v39, %v1151_v39 }
 0xd4e   :  { %2729 = vmatmul.mubr.bf16.vlgmr.msra.gmra.mxu1 %v1152_v40 }
 0xd4f   :  { %2763 = vmatprep.mubr.msk.f32.mxu1 %vm2942_vm1, %v2941_v28 }
 0xe0e   :  { %v1239_v44 = vpop.f32.mrf.mxu1 }
 0xe0f   :  { %v1240_v46 = vadd.f32 %v1239_v44, %v1156_v42 }
 0xe10   :  { %v2730_v47 = vpop.f32.mrf.mxu1 }
 0xe11   :  { %v3277_v48 = vadd.f32 %v1240_v46, %v3208_v50  ;;  %v2859_v50 = vld [vmem:[%s3487_s5 + $0x10] sm:$0xff]  }
 0xe12   :  { %v1242_v52 = vpop.f32.mrf.mxu1  ;;  %2735 = vmatpush3.bf16.msra.mxu0 %v2859_v50 }
 0xe13   :  { %v1284_v51 = vsel %vm36_vm0, %v3277_v48, 0.0  ;;  %2740 = vmatprep.subr.mxu0 %v2941_v28 }
 0xe14   :  { %1285 = vadd.xlane.f32.xlu1 %v1284_v51  ;;  %v2731_v53 = vpop.f32.mrf.mxu1 }
 0xe9d   :  { %v1286_v55 = vpop.xlane.xlu1 %1285 }
 0xe9e   :  { %v1287_v49 = vmul.f32 0.03125, %v1286_v55 }
 0xea0   :  { %v1288_v56 = vsub.f32 %v3277_v48, %v1287_v49 }
 0xea2   :  { %v1289_v20 = vmul.f32 %v1288_v56, %v1288_v56 }
 0xea4   :  { %v1290_v57 = vsel %vm36_vm0, %v1289_v20, 0.0 }
 0xea5   :  { %1291 = vadd.xlane.f32.xlu0 %v1290_v57 }
 0xf2e   :  { %v1292_v58 = vpop.xlane.xlu0 %1291 }
 0xf2f   :  { %v1293_v59 = vmul.f32 0.03125, %v1292_v58 }
 0xf31   :  { %v1294_v60 = vadd.f32 1e-05, %v1293_v59 }
 0xf33   :  { %2894 = vrsqrt.f32 %v1294_v60 }
 0xf40   :  { %v2895_v63 = vpop.eup %2894 }
 0xf41   :  { %v1296_v2 = vmul.f32 %v2895_v63, %v1288_v56  ;;  %v2499_v63 = vld [vmem:[%s3488_s6 + $0x14] sm:$0xf] }
 0xf43   :  { %v1301_v4 = vmul.f32 %v1300_v62, %v1296_v2  ;;  %v1760_v2 = vsel %vm368_vm4, %v2499_v63, 0 }
 0xf45   :  { %v1306_v43 = vadd.f32 %v1305_v3, %v1301_v4 }
 0xf47   :  { %v1307_v5 = vpack.c.bf16 %v1306_v43, %v1306_v43 }
 0xf49   :  { %2737 = vmatmul.mubr.msk.bf16.vlgmr.msra.gmra.mxu0 %vm36_vm0, %v1307_v5 }
 0xf4a   :  { %2742 = vmatprep.mubr.msk.f32.mxu0 %vm2942_vm1, %v2941_v28 }
0x1009   :  { %v1363_v8 = vpop.f32.mrf.mxu0 }
0x100a   :  { %v3306_v9 = vadd.f32 %v2522_v7, %v1363_v8 }
0x100b   :  { %v2738_v12 = vpop.f32.mrf.mxu0 }
0x100c   :  { %1375 = vrot.lane.b32.xlu1 %v3306_v9, %s2950_s27 }
0x100d   :  { %v1366_v14 = vpop.f32.mrf.mxu0 }
0x100f   :  { %v2739_v13 = vpop.f32.mrf.mxu0 }
0x1010   :  { %1590 = vrot.lane.b32.xlu1 %v3306_v9, %s2944_s21  ;;  %s2954_s21 = smov [#allocation2]  }
0x1014   :  { %1588 = vrot.lane.b32.xlu1 %v3306_v9, %s2943_s20 }
0x107e   :  { %v1376_v15 = vpop.permute.xlu1 %1375 }
0x107f   :  { %2741 = vmatpush3.xpose.msk.msra.mxu0 %vm200_vm2, %v1376_v15 }
0x1080   :  { %2745 = vmatprep.subr.mxu0 %v2941_v28 }
0x1082   :  { %2743 = vmatmul.mubr.msk.f32.vlgmr.msra.gmra.mxu0 %vm200_vm2, %v3306_v9  ;;  %v1591_v38 = vpop.permute.xlu1 %1590 }
0x1083   :  { %2747 = vmatprep.mubr.msk.f32.mxu0 %vm2942_vm1, %v2941_v28 }
0x1086   :  { %v1589_v39 = vpop.permute.xlu1 %1588 }
0x1142   :  { %v1447_v16 = vpop.f32.mrf.mxu0 }
0x1143   :  { %v1451_v17 = vmul.f32 0.35355338, %v1447_v16 }
0x1144   :  { %v2744_v18 = vpop.f32.mrf.mxu0 }
0x1145   :  { %v1452_v19 = vadd.f32 %v1451_v17, %v3139_v35  ;;  %v2498_v35 = vld [vmem:[%s3488_s6 + $0x10] sm:$0xf] }
0x1146   :  { %v1545_v32 = vsel %vm368_vm4, %v2498_v35, 0 }
0x1147   :  { %v1453_v21 = vsel %vm200_vm2, %v1452_v19, -inf }
0x1148   :  { %1454 = vmax.xlane.f32.xlu0 %v1453_v21 }
0x11d1   :  { %v1455_v22 = vpop.xlane.xlu0 %1454 }
0x11d2   :  { %v1456_v23 = vsub.f32 %v1452_v19, %v1455_v22 }
0x11d4   :  { %v1457_v6 = vmul.f32 1.442695, %v1456_v23 }
0x11d6   :  { %2896 = vpow2.f32 %v1457_v6 }
0x11e3   :  { %v2897_v24 = vpop.eup %2896 }
0x11e4   :  { %v1459_v25 = vsel %vm200_vm2, %v2897_v24, 0.0 }
0x11e5   :  { %1460 = vadd.xlane.f32.xlu0 %v1459_v25 }
0x11fb   :  { %1464 = vrot.lane.b32.xlu0 %v3306_v9, %s2952_s29 }
0x126e   :  { %v1461_v26 = vpop.xlane.xlu0 %1460 }
0x126f   :  { %2898 = vrcp.f32 %v1461_v26 }
0x1272   :  { %v1465_v27 = vpop.permute.xlu0 %1464 }
0x1273   :  { %2746 = vmatpush3.msra.mxu0 %v1465_v27 }
0x1274   :  { %2750 = vmatprep.subr.bf16.mxu0 %v2941_v28 }
0x127c   :  { %v2899_v29 = vpop.eup %2898 }
0x127d   :  { %v1463_v30 = vmul.f32 %v2899_v29, %v2897_v24 }
0x127f   :  { %2748 = vmatmul.mubr.msk.f32.vlgmr.msra.gmra.mxu0 %vm200_vm2, %v1463_v30  ;;  %v2500_v30 = vld [vmem:[%s3488_s6 + $0x18] sm:$0xf] }
0x1280   :  { %2751 = vmatpush3.bf16.msra.mxu0 %v1545_v32  ;;  %2752 = vmatprep.mubr.msk.bf16.mxu0 %vm2942_vm1, %v2941_v28  ;;  %v1975_v32 = vsel %vm368_vm4, %v2500_v30, 0  ;;  %v2868_v30 = vld [vmem:[%s3490_s8 + $0x48] sm:$0xff]  }
0x1281   :  { %2756 = vmatprep.subr.mxu0 %v2941_v28 }
0x133f   :  { %v1536_v34 = vpop.f32.mrf.mxu0 }
0x1340   :  { %v1540_v36 = vpack.c.bf16 %v1536_v34, %v1536_v34 }
0x1341   :  { %v2749_v37 = vpop.f32.mrf.mxu0 }
0x1342   :  { %2753 = vmatmul.mubr.msk.bf16.vlgmr.msra.gmra.mxu0 %vm200_vm2, %v1540_v36 }
0x1343   :  { %2757 = vmatpush3.xpose.msk.msra.mxu0 %vm200_vm2, %v1591_v38  ;;  %2758 = vmatprep.mubr.msk.f32.mxu0 %vm2942_vm1, %v2941_v28 }
0x1344   :  { %2766 = vmatprep.subr.bf16.mxu0 %v2941_v28 }
0x134a   :  { %2759 = vmatmul.mubr.msk.f32.vlgmr.msra.gmra.mxu0 %vm200_vm2, %v1589_v39 }
0x134b   :  { %2768 = vmatprep.mubr.msk.bf16.mxu0 %vm2942_vm1, %v2941_v28  ;;  %2767 = vmatpush3.bf16.msra.mxu0 %v1760_v2 }
0x134c   :  { %2782 = vmatprep.subr.bf16.mxu0 %v2941_v28 }
0x1402   :  { %v1581_v40 = vpop.f32.mrf.mxu0 }
0x1404   :  { %v2754_v42 = vpop.f32.mrf.mxu0 }
0x1406   :  { %v1584_v44 = vpop.f32.mrf.mxu0 }
0x1408   :  { %v2755_v46 = vpop.f32.mrf.mxu0 }
0x140a   :  { %v1662_v47 = vpop.f32.mrf.mxu0 }
0x140b   :  { %v1666_v52 = vmul.f32 0.35355338, %v1662_v47 }
0x140c   :  { %v2760_v51 = vpop.f32.mrf.mxu0 }
0x140d   :  { %v1667_v53 = vadd.f32 %v1666_v52, %v3081_v54 }
0x140f   :  { %v1668_v55 = vsel %vm200_vm2, %v1667_v53, -inf }
0x1410   :  { %1669 = vmax.xlane.f32.xlu1 %v1668_v55 }
0x1421   :  { %1679 = vrot.lane.b32.xlu1 %v3306_v9, %s2947_s24 }
0x1425   :  { %1803 = vrot.lane.b32.xlu1 %v3306_v9, %s2946_s23 }
0x1499   :  { %v1670_v49 = vpop.xlane.xlu1 %1669 }
0x149a   :  { %v1671_v56 = vsub.f32 %v1667_v53, %v1670_v49 }
0x149c   :  { %v1672_v20 = vmul.f32 1.442695, %v1671_v56 }
0x149d   :  { %v1680_v57 = vpop.permute.xlu1 %1679 }
0x149e   :  { %2900 = vpow2.f32 %v1672_v20  ;;  %2762 = vmatpush3.msra.mxu1 %v1680_v57 }
0x149f   :  { %2772 = vmatprep.subr.mxu1 %v2941_v28 }
0x14a1   :  { %v1804_v62 = vpop.permute.xlu1 %1803 }
0x14ab   :  { %v2901_v33 = vpop.eup %2900 }
0x14ac   :  { %v1674_v54 = vsel %vm200_vm2, %v2901_v33, 0.0 }
0x14ad   :  { %1675 = vadd.xlane.f32.xlu0 %v1674_v54 }
0x14c3   :  { %1805 = vrot.lane.b32.xlu0 %v3306_v9, %s2945_s22  ;;  %s2451_s22 = sshll.u32 %s2954_s21, 4  ;;  %s2452_s22 = int_to_ptr.vmem [resolvable:$true] %s2451_s22 }
0x14c4   :  { %s2919_s23 = scalar_lea.vmem %s2452_s22, 128  ;;  %p2924_p1 = scmp.lt.s32.totalorder %s2452_s22, %s2452_s22 }
0x14c5   :  { %p2920_p0 = scmp.ne.s32.totalorder %s2452_s22, %s2919_s23  ;;  %p2925_p2 = scmp.lt.s32.totalorder %s2919_s23, %s2919_s23 }
0x14c7   :  { %p2926_p3 = por %p2925_p2, %p2924_p1 }
0x14c9   :  { %p2927_p4 = pnand %p2926_p3, %p2920_p0 }
0x1536   :  { %v1676_v50 = vpop.xlane.xlu0 %1675 }
0x1537   :  { %2902 = vrcp.f32 %v1676_v50 }
0x153a   :  { %v1806_v60 = vpop.permute.xlu0 %1805 }
0x1544   :  { %v2903_v58 = vpop.eup %2902 }
0x1545   :  { %v1678_v59 = vmul.f32 %v2903_v58, %v2901_v33 }
0x1547   :  { %2764 = vmatmul.mubr.msk.f32.vlgmr.msra.gmra.mxu1 %vm200_vm2, %v1678_v59 }
0x1548   :  { %2773 = vmatpush3.xpose.msk.msra.mxu1 %vm200_vm2, %v1806_v60  ;;  %2774 = vmatprep.mubr.msk.f32.mxu1 %vm2942_vm1, %v2941_v28 }
0x1549   :  { %2777 = vmatprep.subr.mxu1 %v2941_v28 }
0x154b   :  { %2775 = vmatmul.mubr.msk.f32.vlgmr.msra.gmra.mxu1 %vm200_vm2, %v1804_v62 }
0x154c   :  { %2779 = vmatprep.mubr.msk.f32.mxu1 %vm2942_vm1, %v2941_v28 }
0x1607   :  { %v1751_v3 = vpop.f32.mrf.mxu1 }
0x1608   :  { %v1755_v4 = vpack.c.bf16 %v1751_v3, %v1751_v3 }
0x1609   :  { %v2765_v43 = vpop.f32.mrf.mxu1 }
0x160a   :  { %2769 = vmatmul.mubr.msk.bf16.vlgmr.msra.gmra.mxu0 %vm200_vm2, %v1755_v4 }
0x160b   :  { %v1877_v5 = vpop.f32.mrf.mxu1  ;;  %2784 = vmatprep.mubr.msk.bf16.mxu0 %vm2942_vm1, %v2941_v28  ;;  %2783 = vmatpush3.bf16.msra.mxu0 %v1975_v32  ;;  %v2869_v32 = vld [vmem:[%s3490_s8 + $0x40] sm:$0xff]  }
0x160c   :  { %v1881_v7 = vmul.f32 0.35355338, %v1877_v5  ;;  %2798 = vmatprep.subr.bf16.mxu0 %v2941_v28 }
0x160d   :  { %v2776_v8 = vpop.f32.mrf.mxu1 }
0x160e   :  { %v1882_v12 = vadd.f32 %v1881_v7, %v3107_v10  ;;  %v1372_v10 = vrot.slane %v3294_v61, %v194_v31 }
0x1610   :  { %v1883_v14 = vsel %vm200_vm2, %v1882_v12, -inf  ;;  %v1373_v19 = vadd.f32 %v1372_v10, %v3277_v48 }
0x1611   :  { %1884 = vmax.xlane.f32.xlu1 %v1883_v14 }
0x1612   :  { %v1587_v21 = vadd.f32 %v1581_v40, %v1373_v19  ;;  %v2249_v19 = vrot.slane %v3294_v61, %v3223_v0 }
0x1622   :  { %2020 = vrot.lane.b32.xlu1 %v3306_v9, %s2949_s26 }
0x1626   :  { %2018 = vrot.lane.b32.xlu1 %v3306_v9, %s2951_s28 }
0x169a   :  { %v1885_v13 = vpop.xlane.xlu1 %1884 }
0x169b   :  { %v1886_v15 = vsub.f32 %v1882_v12, %v1885_v13 }
0x169d   :  { %v1887_v16 = vmul.f32 1.442695, %v1886_v15  ;;  %v2860_v15 = vld [vmem:[%s3489_s7 + $0x18] sm:$0xff]  }
0x169e   :  { %v2021_v29 = vpop.permute.xlu1 %2020 }
0x169f   :  { %2904 = vpow2.f32 %v1887_v16  ;;  %v2861_v16 = vld [vmem:[%s3489_s7 + $0x10] sm:$0xff]  }
0x16a2   :  { %v2019_v48 = vpop.permute.xlu1 %2018 }
0x16ac   :  { %v2905_v17 = vpop.eup %2904 }
0x16ad   :  { %v1889_v18 = vsel %vm200_vm2, %v2905_v17, 0.0 }
0x16ae   :  { %1890 = vadd.xlane.f32.xlu0 %v1889_v18 }
0x16c4   :  { %1894 = vrot.lane.b32.xlu0 %v3306_v9, %s2948_s25 }
0x16ca   :  { %v1796_v22 = vpop.f32.mrf.mxu0 }
0x16cb   :  { %v1802_v23 = vadd.f32 %v1796_v22, %v1587_v21 }
0x16cc   :  { %v2770_v6 = vpop.f32.mrf.mxu0 }
0x16ce   :  { %v1799_v24 = vpop.f32.mrf.mxu0 }
0x16d0   :  { %v2771_v25 = vpop.f32.mrf.mxu0 }
0x1737   :  { %v1891_v26 = vpop.xlane.xlu0 %1890 }
0x1738   :  { %2906 = vrcp.f32 %v1891_v26  ;;  %v2862_v26 = vld [vmem:[%s3490_s8 + $0x78] sm:$0xff]  }
0x173b   :  { %v1895_v27 = vpop.permute.xlu0 %1894 }
0x173c   :  { %2778 = vmatpush3.msra.mxu1 %v1895_v27  ;;  %v2863_v27 = vld [vmem:[%s3490_s8 + $0x70] sm:$0xff]  }
0x173d   :  { %2788 = vmatprep.subr.mxu1 %v2941_v28 }
0x1745   :  { %v2907_v35 = vpop.eup %2906 }
0x1746   :  { %v1893_v31 = vmul.f32 %v2907_v35, %v2905_v17  ;;  %v2864_v35 = vld [vmem:[%s3490_s8 + $0x68] sm:$0xff]  }
0x1748   :  { %2780 = vmatmul.mubr.msk.f32.vlgmr.msra.gmra.mxu1 %vm200_vm2, %v1893_v31  ;;  %v2866_v31 = vld [vmem:[%s3490_s8 + $0x58] sm:$0xff]  }
0x1749   :  { %2789 = vmatpush3.xpose.msk.msra.mxu1 %vm200_vm2, %v2021_v29  ;;  %2790 = vmatprep.mubr.msk.f32.mxu1 %vm2942_vm1, %v2941_v28  ;;  %v2865_v29 = vld [vmem:[%s3490_s8 + $0x60] sm:$0xff]  }
0x174a   :  { %2793 = vmatprep.subr.mxu1 %v2941_v28 }
0x174c   :  { %2791 = vmatmul.mubr.msk.f32.vlgmr.msra.gmra.mxu1 %vm200_vm2, %v2019_v48  ;;  %v2867_v48 = vld [vmem:[%s3490_s8 + $0x50] sm:$0xff]  }
0x174d   :  { %2795 = vmatprep.mubr.msk.f32.mxu1 %vm2942_vm1, %v2941_v28 }
0x1808   :  { %v1966_v34 = vpop.f32.mrf.mxu1 }
0x1809   :  { %v1970_v36 = vpack.c.bf16 %v1966_v34, %v1966_v34  ;;  %v2542_v34 = vld [vmem:[%s3486_s4 + $0x1] ss:$0 sm:$0xff] }
0x180a   :  { %v2781_v37 = vpop.f32.mrf.mxu1 }
0x180b   :  { %2785 = vmatmul.mubr.msk.bf16.vlgmr.msra.gmra.mxu0 %vm200_vm2, %v1970_v36 }
0x180c   :  { %v2092_v38 = vpop.f32.mrf.mxu1  ;;  %2800 = vmatprep.mubr.msk.bf16.mxu0 %vm2942_vm1, %v2941_v28 }
0x180d   :  { %v2096_v39 = vmul.f32 0.35355338, %v2092_v38 }
0x180e   :  { %v2792_v40 = vpop.f32.mrf.mxu1 }
0x180f   :  { %v2097_v42 = vadd.f32 %v2096_v39, %v3149_v45 }
0x1811   :  { %v2098_v44 = vsel %vm200_vm2, %v2097_v42, -inf }
0x1812   :  { %2099 = vmax.xlane.f32.xlu1 %v2098_v44 }
0x189b   :  { %v2100_v46 = vpop.xlane.xlu1 %2099 }
0x189c   :  { %v2101_v47 = vsub.f32 %v2097_v42, %v2100_v46 }
0x189e   :  { %v2102_v52 = vmul.f32 1.442695, %v2101_v47 }
0x18a0   :  { %2908 = vpow2.f32 %v2102_v52 }
0x18ad   :  { %v2909_v51 = vpop.eup %2908 }
0x18ae   :  { %v2104_v53 = vsel %vm200_vm2, %v2909_v51, 0.0 }
0x18af   :  { %2105 = vadd.xlane.f32.xlu0 %v2104_v53 }
0x18c5   :  { %2109 = vrot.lane.b32.xlu0 %v3306_v9, %s2953_s30  ;;  %v2501_v9 = vld [vmem:[%s3488_s6 + $0x1c] sm:$0xf] }
0x18c6   :  { %v2190_v58 = vsel %vm368_vm4, %v2501_v9, 0 }
0x18c7   :  { %2799 = vmatpush3.bf16.msra.mxu0 %v2190_v58 }
0x18c8   :  { %2812 = vmatprep.subr.bf16.mxu0 %v2941_v28 }
0x18cb   :  { %v2011_v55 = vpop.f32.mrf.mxu0 }
0x18cc   :  { %v2017_v49 = vadd.f32 %v2011_v55, %v1802_v23  ;;  %v2254_v23 = vrot.slane %v3294_v61, %v3226_v1 }
0x18cd   :  { %v2786_v56 = vpop.f32.mrf.mxu0 }
0x18ce   :  { %v2331_v56 = vrot.slane %v3294_v61, %v1155_v41  ;;  %v2918_v61 = vld [vmem:[%s3483_s1] sm:$0xf] }
0x18cf   :  { %v2014_v20 = vpop.f32.mrf.mxu0 }
0x18d1   :  { %v2787_v57 = vpop.f32.mrf.mxu0 }
0x1938   :  { %v2106_v45 = vpop.xlane.xlu0 %2105 }
0x1939   :  { %2910 = vrcp.f32 %v2106_v45 }
0x193c   :  { %v2110_v33 = vpop.permute.xlu0 %2109 }
0x193d   :  { %2794 = vmatpush3.msra.mxu1 %v2110_v33 }
0x193e   :  { %2804 = vmatprep.subr.bf16.mxu1 %v2941_v28 }
0x1946   :  { %v2911_v54 = vpop.eup %2910 }
0x1947   :  { %v2108_v50 = vmul.f32 %v2911_v54, %v2909_v51 }
0x1949   :  { %2796 = vmatmul.mubr.msk.f32.vlgmr.msra.gmra.mxu1 %vm200_vm2, %v2108_v50 }
0x194a   :  { %2808 = vmatprep.mubr.msk.bf16.mxu1 %vm2942_vm1, %v2941_v28  ;;  %2805 = vmatpush3.bf16.msra.mxu1 %v2860_v15 }
0x194b   :  { %2806 = vmatprep.subr.bf16.mxu1 %v2941_v28 }
0x194e   :  { %2807 = vmatpush3.bf16.msra.mxu1 %v2861_v16 }
0x1a09   :  { %v2181_v59 = vpop.f32.mrf.mxu1 }
0x1a0a   :  { %v2185_v60 = vpack.c.bf16 %v2181_v59, %v2181_v59 }
0x1a0b   :  { %v2797_v62 = vpop.f32.mrf.mxu1 }
0x1a0c   :  { %2801 = vmatmul.mubr.msk.bf16.vlgmr.msra.gmra.mxu0 %vm200_vm2, %v2185_v60 }
0x1a0d   :  { %2828 = vmatprep.mubr.msk.bf16.mxu0 %vm2942_vm1, %v2941_v28  ;;  %2813 = vmatpush3.bf16.msra.mxu0 %v2862_v26 }
0x1a0e   :  { %2814 = vmatprep.subr.bf16.mxu0 %v2941_v28 }
0x1a11   :  { %2815 = vmatpush3.bf16.msra.mxu0 %v2863_v27 }
0x1a12   :  { %2816 = vmatprep.subr.bf16.mxu0 %v2941_v28 }
0x1a15   :  { %2817 = vmatpush3.bf16.msra.mxu0 %v2864_v35 }
0x1a16   :  { %2818 = vmatprep.subr.bf16.mxu0 %v2941_v28 }
0x1a19   :  { %2819 = vmatpush3.bf16.msra.mxu0 %v2865_v29 }
0x1a1a   :  { %2820 = vmatprep.subr.bf16.mxu0 %v2941_v28 }
0x1a1d   :  { %2821 = vmatpush3.bf16.msra.mxu0 %v2866_v31 }
0x1a1e   :  { %2822 = vmatprep.subr.bf16.mxu0 %v2941_v28 }
0x1a21   :  { %2823 = vmatpush3.bf16.msra.mxu0 %v2867_v48 }
0x1a22   :  { %2824 = vmatprep.subr.bf16.mxu0 %v2941_v28 }
0x1a25   :  { %2825 = vmatpush3.bf16.msra.mxu0 %v2868_v30 }
0x1a26   :  { %2826 = vmatprep.subr.bf16.mxu0 %v2941_v28 }
0x1a29   :  { %2827 = vmatpush3.bf16.msra.mxu0 %v2869_v32 }
0x1acc   :  { %v2226_v63 = vpop.f32.mrf.mxu0 }
0x1acd   :  { %v3415_v2 = vadd.f32 %v2226_v63, %v2017_v49 }
0x1ace   :  { %v2802_v3 = vpop.f32.mrf.mxu0 }
0x1acf   :  { %v2233_v4 = vsel %vm36_vm0, %v3415_v2, 0.0 }
0x1ad0   :  { %2234 = vadd.xlane.f32.xlu1 %v2233_v4  ;;  %v2229_v43 = vpop.f32.mrf.mxu0 }
0x1ad2   :  { %v2803_v5 = vpop.f32.mrf.mxu0 }
0x1ad3   :  { %v2442_v5 = vrot.slane %v2918_v61, %v3226_v1 }
0x1b59   :  { %v2235_v7 = vpop.xlane.xlu1 %2234 }
0x1b5a   :  { %v2236_v8 = vmul.f32 0.03125, %v2235_v7 }
0x1b5c   :  { %v2237_v12 = vsub.f32 %v3415_v2, %v2236_v8 }
0x1b5e   :  { %v2238_v14 = vmul.f32 %v2237_v12, %v2237_v12 }
0x1b60   :  { %v2239_v13 = vsel %vm36_vm0, %v2238_v14, 0.0 }
0x1b61   :  { %2240 = vadd.xlane.f32.xlu1 %v2239_v13 }
0x1bea   :  { %v2241_v17 = vpop.xlane.xlu1 %2240 }
0x1beb   :  { %v2242_v18 = vmul.f32 0.03125, %v2241_v17 }
0x1bed   :  { %v2243_v10 = vadd.f32 1e-05, %v2242_v18 }
0x1bef   :  { %2912 = vrsqrt.f32 %v2243_v10 }
0x1bfc   :  { %v2913_v21 = vpop.eup %2912 }
0x1bfd   :  { %v2245_v22 = vmul.f32 %v2913_v21, %v2237_v12 }
0x1bff   :  { %v2250_v6 = vmul.f32 %v2249_v19, %v2245_v22 }
0x1c01   :  { %v2255_v24 = vadd.f32 %v2254_v23, %v2250_v6 }
0x1c03   :  { %v2256_v25 = vpack.c.bf16 %v2255_v24, %v2255_v24 }
0x1c05   :  { %2809 = vmatmul.mubr.msk.bf16.vlgmr.msra.gmra.mxu1 %vm36_vm0, %v2256_v25 }
0x1cc5   :  { %v2312_v36 = vpop.f32.mrf.mxu1 }
0x1cc6   :  { %v2313_v37 = vadd.f32 %v2542_v34, %v2312_v36 }
0x1cc7   :  { %v2810_v38 = vpop.f32.mrf.mxu1 }
0x1cc8   :  { %v2318_v39 = vmul.f32 %v2313_v37, %v2313_v37 }
0x1cc9   :  { %v2315_v40 = vpop.f32.mrf.mxu1 }
0x1cca   :  { %v2319_v42 = vmul.f32 %v2318_v39, %v2313_v37 }
0x1ccb   :  { %v2811_v44 = vpop.f32.mrf.mxu1 }
0x1ccc   :  { %v2320_v46 = vmul.f32 0.044715, %v2319_v42 }
0x1cce   :  { %v2321_v47 = vadd.f32 %v2320_v46, %v2313_v37 }
0x1cd0   :  { %v2322_v52 = vmul.f32 0.7978846, %v2321_v47 }
0x1cd2   :  { %2914 = vtanh.f32 %v2322_v52 }
0x1cdf   :  { %v2915_v51 = vpop.eup %2914 }
0x1ce0   :  { %v2324_v53 = vadd.f32 1.0, %v2915_v51 }
0x1ce2   :  { %v2325_v55 = vmul.f32 0.5, %v2324_v53 }
0x1ce4   :  { %v2326_v28 = vmul.f32 %v2325_v55, %v2313_v37 }
0x1ce6   :  { %v2327_v49 = vpack.c.bf16 %v2326_v28, %v2326_v28 }
0x1ce8   :  { %2829 = vmatmul.mubr.bf16.vlgmr.msra.gmra.mxu0 %v2327_v49 }
0x1da8   :  { %v2414_v20 = vpop.f32.mrf.mxu0 }
0x1da9   :  { %v2415_v57 = vadd.f32 %v2414_v20, %v2331_v56 }
0x1daa   :  { %v2830_v45 = vpop.f32.mrf.mxu0 }
0x1dab   :  { %v2420_v33 = vadd.f32 %v2415_v57, %v3415_v2  ;;  %v2437_v2 = vrot.slane %v2918_v61, %v3223_v0 }
0x1dac   :  { %v2417_v54 = vpop.f32.mrf.mxu0 }
0x1dad   :  { %v2421_v50 = vsel %vm36_vm0, %v2420_v33, 0.0 }
0x1dae   :  { %2422 = vadd.xlane.f32.xlu1 %v2421_v50  ;;  %v2831_v9 = vpop.f32.mrf.mxu0 }
0x1e37   :  { %v2423_v58 = vpop.xlane.xlu1 %2422 }
0x1e38   :  { %v2424_v59 = vmul.f32 0.03125, %v2423_v58 }
0x1e3a   :  { %v2425_v60 = vsub.f32 %v2420_v33, %v2424_v59 }
0x1e3c   :  { %v2426_v62 = vmul.f32 %v2425_v60, %v2425_v60 }
0x1e3e   :  { %v2427_v63 = vsel %vm36_vm0, %v2426_v62, 0.0 }
0x1e3f   :  { %2428 = vadd.xlane.f32.xlu1 %v2427_v63 }
0x1ec8   :  { %v2429_v11 = vpop.xlane.xlu1 %2428 }
0x1ec9   :  { %v2430_v3 = vmul.f32 0.03125, %v2429_v11 }
0x1ecb   :  { %v2431_v41 = vadd.f32 1e-05, %v2430_v3 }
0x1ecd   :  { %2916 = vrsqrt.f32 %v2431_v41 }
0x1eda   :  { %v2917_v4 = vpop.eup %2916 }
0x1edb   :  { %v2433_v43 = vmul.f32 %v2917_v4, %v2425_v60 }
0x1edd   :  { %v2438_v7 = vmul.f32 %v2437_v2, %v2433_v43 }
0x1edf   :  { %v2443_v8 = vadd.f32 %v2442_v5, %v2438_v7 }
0x1ee1   :  { %2444 = vst.msk [vmem:[#allocation2] sm:$0xff] %vm36_vm0, %v2443_v8 }
0x1ee2   :  { %2930 = shalt.err (!%p2927_p4)
}
0x1ee3   :  { %2454 = dma.vmem_to_hbm [thread:$0]  %s2452_s22, 128, %s3491_s9, [#allocation3]  }
0x1ee4   :  { %2939 = dma.done.wait [#allocation3], 128  }
0x1ee5   :  { %2940 = vsyncadd [#allocation3], 4294967168 }
0x1ee6   :  { %2458 = vsyncpa [#allocation3], 1 }

</bundles_post_ra>
